<compile_context>
chip_gen: v5e
topology: v5e:2x2
jax: 0.10.0
libtpu: 0.0.40
codegen_flags: <defaults>
</compile_context>

<pallas_src>
import math
from functools import partial

import jax
import jax.numpy as jnp
from jax.experimental import pallas as pl
from jax.experimental.pallas import tpu as pltpu

LANE = 128          # TPU lane width: padded class dimension & packed-output width
NEG_INF = -1e30     # finite "-inf" for padded class lanes (exp underflows to exactly 0)


def _softmax_rows(x):
    m = jnp.max(x, axis=1, keepdims=True)
    e = jnp.exp(x - m)
    return e / jnp.sum(e, axis=1, keepdims=True)


def _masked_ce_rows(probs, label, n_valid):
    """Per-row CrossEntropy(probs, label) over the first `n_valid` lanes only.

    `probs` is an already-softmaxed (B, LANE) slab: the reference applies CE to
    softmax outputs (double-softmax quirk), reproduced faithfully here."""
    B, L = probs.shape
    lane = jax.lax.broadcasted_iota(jnp.int32, (B, L), 1)
    valid = lane < n_valid
    x = jnp.where(valid, probs, NEG_INF)
    m = jnp.max(x, axis=1, keepdims=True)
    e = jnp.where(valid, jnp.exp(x - m), 0.0)
    lse = m + jnp.log(jnp.sum(e, axis=1, keepdims=True))
    onehot = (lane == label).astype(jnp.float32)
    return -jnp.sum(onehot * (x - lse), axis=1, keepdims=True)        # (B, 1)


def net_kernel(feat_ref, wc_ref, bc_ref, wt_ref, bt_ref, ws_ref, bsp_ref,
               wm_ref, bm_ref, label_ref, out_ref, *, n_classes, n_conf):
    feat = feat_ref[...]                    # (B, C*T) flat backbone features
    label = label_ref[...]                  # (B, 1) int32
    B = feat.shape[0]
    L = out_ref.shape[1]                    # 128

    # ---- ConfidenceLayer Linear(C*T, 2) (lane-padded to 128) + msp confidence ----
    logit = jnp.dot(feat, wc_ref[...], preferred_element_type=jnp.float32) + bc_ref[...]
    sm = _softmax_rows(logit)               # (B, 128); padded lanes are exactly 0
    conf = jnp.max(sm, axis=1, keepdims=True)             # (B, 1) == SAMPLE_conf
    confidence = 1.0 / (1.0 + jnp.exp(-conf))             # sigmoid scaling
    c0 = confidence[0:1, 0:1]               # sample-0 confidence as global scalar (quirk)
    wfeat = feat * c0                       # (B, C*T)

    # ---- TemporalAttn: per-channel Linear(T,T) as one block-diagonal MXU dot -----
    t_attn = jnp.maximum(
        jnp.dot(wfeat, wt_ref[...], preferred_element_type=jnp.float32) + bt_ref[...],
        0.0)
    tmp_x = wfeat * t_attn                  # (B, C*T)

    # ---- SpatialAttn: per-timestep Linear(C,C) as one kron MXU dot;
    #      legacy F.softmax default dim=0  ->  softmax over the BATCH axis ---------
    sfc = jnp.dot(wfeat, ws_ref[...], preferred_element_type=jnp.float32) + bsp_ref[...]
    mb = jnp.max(sfc, axis=0, keepdims=True)
    eb = jnp.exp(sfc - mb)
    attn = eb / jnp.sum(eb, axis=0, keepdims=True)
    sp_x = wfeat * attn                     # (B, C*T)

    # ---- Fusion (sum) + MSclassifier Linear(C*T, K) (lane-padded) + softmax ------
    fused = tmp_x + sp_x                    # (B, C*T)
    ms = jnp.dot(fused, wm_ref[...], preferred_element_type=jnp.float32) + bm_ref[...]
    ms_logit = _softmax_rows(ms)            # (B, 128); 0 beyond the K real classes

    # ---- Losses (CE applied to already-softmaxed outputs, exactly as reference) --
    ms_per = _masked_ce_rows(ms_logit, label, n_classes)              # (B, 1)
    conf_per = _masked_ce_rows(sm, label, n_conf)                     # (B, 1)
    loss = (jnp.mean(ms_per, axis=0, keepdims=True)
            + jnp.mean(conf_per, axis=0, keepdims=True))              # (1, 1)

    # ---- Pack all results into one lane-dense output slab (single writeback) -----
    out_ref[...] = jnp.zeros(out_ref.shape, jnp.float32)
    out_ref[0:B, :] = ms_logit                                        # rows [0, B)
    out_ref[B:2 * B, :] = jnp.broadcast_to(conf, (B, L))              # rows [B, 2B)
    out_ref[2 * B:2 * B + 1, :] = jnp.broadcast_to(loss, (1, L))      # row 2B


def prepare_params(params):
    """One-time parameter repack (hoisted out of the per-step path)."""
    wc, bc, wt, bt, ws, bsp, wm, bm = [p.astype(jnp.float32) for p in params]
    K = wm.shape[0]
    C = ws.shape[0]
    T = wt.shape[0]
    CT = C * T
    # ConfidenceLayer Linear(CT, 2): columns padded to 128 lanes; padded bias lanes
    # get -1e30 so their softmax probability is exactly 0.
    wc_p = jnp.zeros((CT, LANE), jnp.float32).at[:, :wc.shape[0]].set(wc.T)
    bc_p = jnp.full((1, LANE), NEG_INF, jnp.float32).at[0, :bc.shape[0]].set(bc)
    # TemporalAttn Linear(T, T), applied per channel block of the flat (C*T) row:
    # block-diagonal matrix kron(I_C, wt.T).
    wt_big = jnp.kron(jnp.eye(C, dtype=jnp.float32), wt.T)            # (CT, CT)
    bt_big = jnp.tile(bt, C).reshape(1, CT)
    # SpatialAttn Linear(C, C), contracting over channels at every time step of the
    # flat row: kron(ws.T, I_T).
    ws_big = jnp.kron(ws.T, jnp.eye(T, dtype=jnp.float32))            # (CT, CT)
    bsp_big = jnp.repeat(bsp, T).reshape(1, CT)
    # MSclassifier Linear(CT, K): columns padded to 128 lanes.
    wm_p = jnp.zeros((CT, LANE), jnp.float32).at[:, :K].set(wm.T)
    bm_p = jnp.full((1, LANE), NEG_INF, jnp.float32).at[0, :K].set(bm)
    return (wc_p, bc_p, wt_big, bt_big, ws_big, bsp_big, wm_p, bm_p)


@partial(jax.jit, static_argnames=("n_classes",))
def net_forward(x, label, prepped, n_classes=2):
    """x: EEGNet4 feature map (B, C, 1, T) NCHW.  Returns (SAMPLE_conf, Loss, MS_logit)."""
    B, C, _, T = x.shape
    feat_flat = x.reshape(B, C * T).astype(jnp.float32)   # == .view(B,-1,T).reshape(B,-1)
    label2 = label.reshape(B, 1).astype(jnp.int32)
    n_rows = max(8, ((2 * B + 1 + 7) // 8) * 8)           # packed output: sublane-aligned

    inputs = (feat_flat,) + tuple(prepped) + (label2,)
    vmem = pl.BlockSpec(memory_space=pltpu.MemorySpace.VMEM)
    packed = pl.pallas_call(
        partial(net_kernel, n_classes=n_classes, n_conf=2),
        out_shape=jax.ShapeDtypeStruct((n_rows, LANE), jnp.float32),
        in_specs=[vmem] * len(inputs),
        out_specs=vmem,
    )(*inputs)

    ms_logit = packed[:B, :n_classes]      # (B, K)
    sample_conf = packed[B:2 * B, 0]       # (B,)
    loss = packed[2 * B, 0]                # scalar
    return sample_conf, loss, ms_logit


def init_linear(key, out_dim, in_dim):
    """PyTorch nn.Linear default init: U(-1/sqrt(fan_in), 1/sqrt(fan_in))."""
    kw, kb = jax.random.split(key)
    bound = 1.0 / math.sqrt(in_dim)
    W = jax.random.uniform(kw, (out_dim, in_dim), jnp.float32, -bound, bound)
    b = jax.random.uniform(kb, (out_dim,), jnp.float32, -bound, bound)
    return W, b


if __name__ == "__main__":
    B, C, T, K = 2, 8, 46, 2     # BATCH, backbone channels, time steps (=> 368 feats), n_classes

    key = jax.random.PRNGKey(0)
    k_feat, k_lab, kc, kt, ks, km = jax.random.split(key, 6)

    # Backbone (EEGNet4) feature map, NCHW:
    x = jax.random.normal(k_feat, (B, C, 1, T), jnp.float32)
    label = jax.random.randint(k_lab, (B,), 0, K)

    wc, bc = init_linear(kc, 2, C * T)     # ConfidenceLayer: Linear(368, 2)
    wt, bt = init_linear(kt, T, T)         # TemporalAttn:    Linear(46, 46)
    ws, bsp = init_linear(ks, C, C)        # SpatialAttn:     Linear(8, 8)
    wm, bm = init_linear(km, K, C * T)     # MSclassifier:    Linear(368, n_classes)

    prepped = prepare_params((wc, bc, wt, bt, ws, bsp, wm, bm))
    sample_conf, loss, ms_logit = net_forward(x, label, prepped, n_classes=K)
    jax.block_until_ready((sample_conf, loss, ms_logit))
    print("KERNEL_OK")
</pallas_src>

<mosaic_0001>
module attributes {stable_mosaic.version = 11 : i64} {
  func.func @net_kernel(%arg0: memref<2x368xf32, #tpu.memory_space<vmem>>, %arg1: memref<368x128xf32, #tpu.memory_space<vmem>>, %arg2: memref<1x128xf32, #tpu.memory_space<vmem>>, %arg3: memref<368x368xf32, #tpu.memory_space<vmem>>, %arg4: memref<1x368xf32, #tpu.memory_space<vmem>>, %arg5: memref<368x368xf32, #tpu.memory_space<vmem>>, %arg6: memref<1x368xf32, #tpu.memory_space<vmem>>, %arg7: memref<368x128xf32, #tpu.memory_space<vmem>>, %arg8: memref<1x128xf32, #tpu.memory_space<vmem>>, %arg9: memref<2x1xi32, #tpu.memory_space<vmem>>, %arg10: memref<8x128xf32, #tpu.memory_space<vmem>>) attributes {dimension_semantics = [], scalar_prefetch = 0 : i64, scratch_operands = 0 : i64, tpu.core_type = #tpu.core_type<tc>} {
    %c0 = arith.constant 0 : index
    %c0_0 = arith.constant 0 : index
    %0 = vector.load %arg0[%c0, %c0_0] : memref<2x368xf32, #tpu.memory_space<vmem>>, vector<2x368xf32>
    %c0_1 = arith.constant 0 : index
    %c0_2 = arith.constant 0 : index
    %1 = vector.load %arg9[%c0_1, %c0_2] : memref<2x1xi32, #tpu.memory_space<vmem>>, vector<2x1xi32>
    %c0_3 = arith.constant 0 : index
    %c0_4 = arith.constant 0 : index
    %2 = vector.load %arg1[%c0_3, %c0_4] : memref<368x128xf32, #tpu.memory_space<vmem>>, vector<368x128xf32>
    %cst = arith.constant dense<0.000000e+00> : vector<2x128xf32>
    %3 = tpu.matmul %0, %2, %cst {dimension_numbers = #tpu.dot_dimension_numbers<[1], [0], [0], [1], [0, 0, 1, 1], [], []>} : vector<2x368xf32>, vector<368x128xf32>, vector<2x128xf32> -> vector<2x128xf32>
    %c0_5 = arith.constant 0 : index
    %c0_6 = arith.constant 0 : index
    %4 = vector.load %arg2[%c0_5, %c0_6] : memref<1x128xf32, #tpu.memory_space<vmem>>, vector<1x128xf32>
    %5 = vector.broadcast %4 : vector<1x128xf32> to vector<2x128xf32>
    %6 = arith.addf %3, %5 : vector<2x128xf32>
    %cst_7 = arith.constant dense<0xFF800000> : vector<2xf32>
    %7 = vector.multi_reduction <maximumf>, %6, %cst_7 [1] : vector<2x128xf32> to vector<2xf32>
    %8 = vector.shape_cast %7 : vector<2xf32> to vector<2x1xf32>
    %9 = vector.broadcast %8 : vector<2x1xf32> to vector<2x128xf32>
    %10 = arith.subf %6, %9 : vector<2x128xf32>
    %11 = math.exp %10 : vector<2x128xf32>
    %cst_8 = arith.constant dense<0.000000e+00> : vector<2xf32>
    %12 = vector.multi_reduction <add>, %11, %cst_8 [1] : vector<2x128xf32> to vector<2xf32>
    %13 = vector.shape_cast %12 : vector<2xf32> to vector<2x1xf32>
    %14 = vector.broadcast %13 : vector<2x1xf32> to vector<2x128xf32>
    %15 = arith.divf %11, %14 : vector<2x128xf32>
    %cst_9 = arith.constant dense<0xFF800000> : vector<2xf32>
    %16 = vector.multi_reduction <maximumf>, %15, %cst_9 [1] : vector<2x128xf32> to vector<2xf32>
    %17 = vector.shape_cast %16 : vector<2xf32> to vector<2x1xf32>
    %cst_10 = arith.constant 0.000000e+00 : f32
    %18 = vector.broadcast %cst_10 : f32 to vector<2x1xf32>
    %19 = arith.subf %18, %17 : vector<2x1xf32>
    %20 = math.exp %19 : vector<2x1xf32>
    %cst_11 = arith.constant 1.000000e+00 : f32
    %21 = vector.broadcast %cst_11 : f32 to vector<2x1xf32>
    %22 = arith.addf %21, %20 : vector<2x1xf32>
    %cst_12 = arith.constant 1.000000e+00 : f32
    %23 = vector.broadcast %cst_12 : f32 to vector<2x1xf32>
    %24 = arith.divf %23, %22 : vector<2x1xf32>
    %25 = vector.extract_strided_slice %24 {offsets = [0, 0], sizes = [1, 1], strides = [1, 1]} : vector<2x1xf32> to vector<1x1xf32>
    %26 = vector.broadcast %25 : vector<1x1xf32> to vector<2x368xf32>
    %27 = arith.mulf %0, %26 : vector<2x368xf32>
    %c0_13 = arith.constant 0 : index
    %c0_14 = arith.constant 0 : index
    %28 = vector.load %arg3[%c0_13, %c0_14] : memref<368x368xf32, #tpu.memory_space<vmem>>, vector<368x368xf32>
    %cst_15 = arith.constant dense<0.000000e+00> : vector<2x368xf32>
    %29 = tpu.matmul %27, %28, %cst_15 {dimension_numbers = #tpu.dot_dimension_numbers<[1], [0], [0], [1], [0, 0, 1, 1], [], []>} : vector<2x368xf32>, vector<368x368xf32>, vector<2x368xf32> -> vector<2x368xf32>
    %c0_16 = arith.constant 0 : index
    %c0_17 = arith.constant 0 : index
    %30 = vector.load %arg4[%c0_16, %c0_17] : memref<1x368xf32, #tpu.memory_space<vmem>>, vector<1x368xf32>
    %31 = vector.broadcast %30 : vector<1x368xf32> to vector<2x368xf32>
    %32 = arith.addf %29, %31 : vector<2x368xf32>
    %cst_18 = arith.constant 0.000000e+00 : f32
    %33 = vector.broadcast %cst_18 : f32 to vector<2x368xf32>
    %34 = arith.maximumf %32, %33 : vector<2x368xf32>
    %35 = arith.mulf %27, %34 : vector<2x368xf32>
    %c0_19 = arith.constant 0 : index
    %c0_20 = arith.constant 0 : index
    %36 = vector.load %arg5[%c0_19, %c0_20] : memref<368x368xf32, #tpu.memory_space<vmem>>, vector<368x368xf32>
    %cst_21 = arith.constant dense<0.000000e+00> : vector<2x368xf32>
    %37 = tpu.matmul %27, %36, %cst_21 {dimension_numbers = #tpu.dot_dimension_numbers<[1], [0], [0], [1], [0, 0, 1, 1], [], []>} : vector<2x368xf32>, vector<368x368xf32>, vector<2x368xf32> -> vector<2x368xf32>
    %c0_22 = arith.constant 0 : index
    %c0_23 = arith.constant 0 : index
    %38 = vector.load %arg6[%c0_22, %c0_23] : memref<1x368xf32, #tpu.memory_space<vmem>>, vector<1x368xf32>
    %39 = vector.broadcast %38 : vector<1x368xf32> to vector<2x368xf32>
    %40 = arith.addf %37, %39 : vector<2x368xf32>
    %cst_24 = arith.constant dense<0xFF800000> : vector<368xf32>
    %41 = vector.multi_reduction <maximumf>, %40, %cst_24 [0] : vector<2x368xf32> to vector<368xf32>
    %42 = vector.shape_cast %41 : vector<368xf32> to vector<1x368xf32>
    %43 = vector.broadcast %42 : vector<1x368xf32> to vector<2x368xf32>
    %44 = arith.subf %40, %43 : vector<2x368xf32>
    %45 = math.exp %44 : vector<2x368xf32>
    %cst_25 = arith.constant dense<0.000000e+00> : vector<368xf32>
    %46 = vector.multi_reduction <add>, %45, %cst_25 [0] : vector<2x368xf32> to vector<368xf32>
    %47 = vector.shape_cast %46 : vector<368xf32> to vector<1x368xf32>
    %48 = vector.broadcast %47 : vector<1x368xf32> to vector<2x368xf32>
    %49 = arith.divf %45, %48 : vector<2x368xf32>
    %50 = arith.mulf %27, %49 : vector<2x368xf32>
    %51 = arith.addf %35, %50 : vector<2x368xf32>
    %c0_26 = arith.constant 0 : index
    %c0_27 = arith.constant 0 : index
    %52 = vector.load %arg7[%c0_26, %c0_27] : memref<368x128xf32, #tpu.memory_space<vmem>>, vector<368x128xf32>
    %cst_28 = arith.constant dense<0.000000e+00> : vector<2x128xf32>
    %53 = tpu.matmul %51, %52, %cst_28 {dimension_numbers = #tpu.dot_dimension_numbers<[1], [0], [0], [1], [0, 0, 1, 1], [], []>} : vector<2x368xf32>, vector<368x128xf32>, vector<2x128xf32> -> vector<2x128xf32>
    %c0_29 = arith.constant 0 : index
    %c0_30 = arith.constant 0 : index
    %54 = vector.load %arg8[%c0_29, %c0_30] : memref<1x128xf32, #tpu.memory_space<vmem>>, vector<1x128xf32>
    %55 = vector.broadcast %54 : vector<1x128xf32> to vector<2x128xf32>
    %56 = arith.addf %53, %55 : vector<2x128xf32>
    %cst_31 = arith.constant dense<0xFF800000> : vector<2xf32>
    %57 = vector.multi_reduction <maximumf>, %56, %cst_31 [1] : vector<2x128xf32> to vector<2xf32>
    %58 = vector.shape_cast %57 : vector<2xf32> to vector<2x1xf32>
    %59 = vector.broadcast %58 : vector<2x1xf32> to vector<2x128xf32>
    %60 = arith.subf %56, %59 : vector<2x128xf32>
    %61 = math.exp %60 : vector<2x128xf32>
    %cst_32 = arith.constant dense<0.000000e+00> : vector<2xf32>
    %62 = vector.multi_reduction <add>, %61, %cst_32 [1] : vector<2x128xf32> to vector<2xf32>
    %63 = vector.shape_cast %62 : vector<2xf32> to vector<2x1xf32>
    %64 = vector.broadcast %63 : vector<2x1xf32> to vector<2x128xf32>
    %65 = arith.divf %61, %64 : vector<2x128xf32>
    %66 = tpu.iota {dimensions = array<i32: 1>} : vector<2x128xi32>
    %c2_i32 = arith.constant 2 : i32
    %67 = vector.broadcast %c2_i32 : i32 to vector<2x128xi32>
    %68 = arith.cmpi slt, %66, %67 : vector<2x128xi32>
    %cst_33 = arith.constant -1.000000e+30 : f32
    %69 = vector.broadcast %cst_33 : f32 to vector<2x128xf32>
    %70 = arith.select %68, %65, %69 : vector<2x128xi1>, vector<2x128xf32>
    %cst_34 = arith.constant dense<0xFF800000> : vector<2xf32>
    %71 = vector.multi_reduction <maximumf>, %70, %cst_34 [1] : vector<2x128xf32> to vector<2xf32>
    %72 = vector.shape_cast %71 : vector<2xf32> to vector<2x1xf32>
    %73 = vector.broadcast %72 : vector<2x1xf32> to vector<2x128xf32>
    %74 = arith.subf %70, %73 : vector<2x128xf32>
    %75 = math.exp %74 : vector<2x128xf32>
    %cst_35 = arith.constant 0.000000e+00 : f32
    %76 = vector.broadcast %cst_35 : f32 to vector<2x128xf32>
    %77 = arith.select %68, %75, %76 : vector<2x128xi1>, vector<2x128xf32>
    %cst_36 = arith.constant dense<0.000000e+00> : vector<2xf32>
    %78 = vector.multi_reduction <add>, %77, %cst_36 [1] : vector<2x128xf32> to vector<2xf32>
    %79 = vector.shape_cast %78 : vector<2xf32> to vector<2x1xf32>
    %80 = math.log %79 : vector<2x1xf32>
    %81 = arith.addf %72, %80 : vector<2x1xf32>
    %82 = vector.broadcast %1 : vector<2x1xi32> to vector<2x128xi32>
    %83 = arith.cmpi eq, %66, %82 : vector<2x128xi32>
    %84 = arith.extui %83 : vector<2x128xi1> to vector<2x128xi32>
    %85 = arith.sitofp %84 : vector<2x128xi32> to vector<2x128xf32>
    %86 = vector.broadcast %81 : vector<2x1xf32> to vector<2x128xf32>
    %87 = arith.subf %70, %86 : vector<2x128xf32>
    %88 = arith.mulf %85, %87 : vector<2x128xf32>
    %cst_37 = arith.constant dense<0.000000e+00> : vector<2xf32>
    %89 = vector.multi_reduction <add>, %88, %cst_37 [1] : vector<2x128xf32> to vector<2xf32>
    %90 = vector.shape_cast %89 : vector<2xf32> to vector<2x1xf32>
    %cst_38 = arith.constant 0.000000e+00 : f32
    %91 = vector.broadcast %cst_38 : f32 to vector<2x1xf32>
    %92 = arith.subf %91, %90 : vector<2x1xf32>
    %93 = tpu.iota {dimensions = array<i32: 1>} : vector<2x128xi32>
    %c2_i32_39 = arith.constant 2 : i32
    %94 = vector.broadcast %c2_i32_39 : i32 to vector<2x128xi32>
    %95 = arith.cmpi slt, %93, %94 : vector<2x128xi32>
    %cst_40 = arith.constant -1.000000e+30 : f32
    %96 = vector.broadcast %cst_40 : f32 to vector<2x128xf32>
    %97 = arith.select %95, %15, %96 : vector<2x128xi1>, vector<2x128xf32>
    %cst_41 = arith.constant dense<0xFF800000> : vector<2xf32>
    %98 = vector.multi_reduction <maximumf>, %97, %cst_41 [1] : vector<2x128xf32> to vector<2xf32>
    %99 = vector.shape_cast %98 : vector<2xf32> to vector<2x1xf32>
    %100 = vector.broadcast %99 : vector<2x1xf32> to vector<2x128xf32>
    %101 = arith.subf %97, %100 : vector<2x128xf32>
    %102 = math.exp %101 : vector<2x128xf32>
    %cst_42 = arith.constant 0.000000e+00 : f32
    %103 = vector.broadcast %cst_42 : f32 to vector<2x128xf32>
    %104 = arith.select %95, %102, %103 : vector<2x128xi1>, vector<2x128xf32>
    %cst_43 = arith.constant dense<0.000000e+00> : vector<2xf32>
    %105 = vector.multi_reduction <add>, %104, %cst_43 [1] : vector<2x128xf32> to vector<2xf32>
    %106 = vector.shape_cast %105 : vector<2xf32> to vector<2x1xf32>
    %107 = math.log %106 : vector<2x1xf32>
    %108 = arith.addf %99, %107 : vector<2x1xf32>
    %109 = vector.broadcast %1 : vector<2x1xi32> to vector<2x128xi32>
    %110 = arith.cmpi eq, %93, %109 : vector<2x128xi32>
    %111 = arith.extui %110 : vector<2x128xi1> to vector<2x128xi32>
    %112 = arith.sitofp %111 : vector<2x128xi32> to vector<2x128xf32>
    %113 = vector.broadcast %108 : vector<2x1xf32> to vector<2x128xf32>
    %114 = arith.subf %97, %113 : vector<2x128xf32>
    %115 = arith.mulf %112, %114 : vector<2x128xf32>
    %cst_44 = arith.constant dense<0.000000e+00> : vector<2xf32>
    %116 = vector.multi_reduction <add>, %115, %cst_44 [1] : vector<2x128xf32> to vector<2xf32>
    %117 = vector.shape_cast %116 : vector<2xf32> to vector<2x1xf32>
    %cst_45 = arith.constant 0.000000e+00 : f32
    %118 = vector.broadcast %cst_45 : f32 to vector<2x1xf32>
    %119 = arith.subf %118, %117 : vector<2x1xf32>
    %cst_46 = arith.constant dense<0.000000e+00> : vector<1xf32>
    %120 = vector.multi_reduction <add>, %92, %cst_46 [0] : vector<2x1xf32> to vector<1xf32>
    %121 = vector.shape_cast %120 : vector<1xf32> to vector<1x1xf32>
    %cst_47 = arith.constant 2.000000e+00 : f32
    %122 = vector.broadcast %cst_47 : f32 to vector<1x1xf32>
    %123 = arith.divf %121, %122 : vector<1x1xf32>
    %cst_48 = arith.constant dense<0.000000e+00> : vector<1xf32>
    %124 = vector.multi_reduction <add>, %119, %cst_48 [0] : vector<2x1xf32> to vector<1xf32>
    %125 = vector.shape_cast %124 : vector<1xf32> to vector<1x1xf32>
    %cst_49 = arith.constant 2.000000e+00 : f32
    %126 = vector.broadcast %cst_49 : f32 to vector<1x1xf32>
    %127 = arith.divf %125, %126 : vector<1x1xf32>
    %128 = arith.addf %123, %127 : vector<1x1xf32>
    %cst_50 = arith.constant 0.000000e+00 : f32
    %129 = vector.broadcast %cst_50 : f32 to vector<8x128xf32>
    %c0_51 = arith.constant 0 : index
    %c0_52 = arith.constant 0 : index
    %130 = vector.load %arg10[%c0_51, %c0_52] : memref<8x128xf32, #tpu.memory_space<vmem>>, vector<8x128xf32>
    tpu.vector_store %arg10[%c0_51, %c0_52], %129 {strides = array<i32>} : memref<8x128xf32, #tpu.memory_space<vmem>>, vector<8x128xf32>,
    %c0_53 = arith.constant 0 : index
    %c0_54 = arith.constant 0 : index
    %131 = vector.load %arg10[%c0_53, %c0_54] : memref<8x128xf32, #tpu.memory_space<vmem>>, vector<2x128xf32>
    tpu.vector_store %arg10[%c0_53, %c0_54], %65 {strides = array<i32>} : memref<8x128xf32, #tpu.memory_space<vmem>>, vector<2x128xf32>,
    %132 = vector.shape_cast %17 : vector<2x1xf32> to vector<2x1xf32>
    %133 = vector.broadcast %132 : vector<2x1xf32> to vector<2x128xf32>
    %c2 = arith.constant 2 : index
    %c0_55 = arith.constant 0 : index
    %134 = vector.load %arg10[%c2, %c0_55] : memref<8x128xf32, #tpu.memory_space<vmem>>, vector<2x128xf32>
    tpu.vector_store %arg10[%c2, %c0_55], %133 {strides = array<i32>} : memref<8x128xf32, #tpu.memory_space<vmem>>, vector<2x128xf32>,
    %135 = vector.shape_cast %128 : vector<1x1xf32> to vector<1x1xf32>
    %136 = vector.broadcast %135 : vector<1x1xf32> to vector<1x128xf32>
    %c4 = arith.constant 4 : index
    %c0_56 = arith.constant 0 : index
    %137 = vector.load %arg10[%c4, %c0_56] : memref<8x128xf32, #tpu.memory_space<vmem>>, vector<1x128xf32>
    tpu.vector_store %arg10[%c4, %c0_56], %136 {strides = array<i32>} : memref<8x128xf32, #tpu.memory_space<vmem>>, vector<1x128xf32>,
    return
  }
}

</mosaic_0001>

<bundles_post_ra>
// kernel: net_forward.1
= control target key start
LH: loop header
LB: loop body
LE: loop exit
PB: predicated region body
PF: predicated region fallthrough
CT: control target
= control target key end

     0   :  { %15 = vsyncpa [#allocation3], 0  ;;  %s1679_s0 = inlined_call_operand.vmem [shape: f32[2,368], index: 0, kind: input, shape index: {}]   ;;  %s1680_s1 = inlined_call_operand.hbm [shape: f32[368,128], index: 1, kind: input, shape index: {}]   ;;  %s1681_s2 = inlined_call_operand.vmem [shape: f32[1,128], index: 2, kind: input, shape index: {}]   ;;  %s1682_s3 = inlined_call_operand.hbm [shape: f32[368,368], index: 3, kind: input, shape index: {}]   ;;  %s1683_s4 = inlined_call_operand.vmem [shape: f32[1,368], index: 4, kind: input, shape index: {}]   ;;  %s1684_s5 = inlined_call_operand.hbm [shape: f32[368,368], index: 5, kind: input, shape index: {}]   ;;  %s1685_s6 = inlined_call_operand.vmem [shape: f32[1,368], index: 6, kind: input, shape index: {}]   ;;  %s1686_s7 = inlined_call_operand.hbm [shape: f32[368,128], index: 7, kind: input, shape index: {}]   ;;  %s1687_s8 = inlined_call_operand.vmem [shape: f32[1,128], index: 8, kind: input, shape index: {}]   ;;  %s1688_s9 = inlined_call_operand.vmem [shape: s32[2,1], index: 9, kind: input, shape index: {}]   ;;  %s1689_s10 = inlined_call_operand.vmem [shape: f32[8,128], index: 10, kind: output, shape index: {}]  }
   0x1   :  { %16 = vsyncpa [#allocation5], 0  ;;  %s39_s15 = sshll.u32 %s1682_s3, 4  ;;  %s40_s15 = int_to_ptr.hbm [resolvable:$true] %s39_s15 }
   0x2   :  { %17 = vsyncpa [#allocation8], 0  ;;  %s1444_s16 = smov [#allocation4]   ;;  %s24_s20 = sshll.u32 %s1680_s1, 4  ;;  %s25_s20 = int_to_ptr.hbm [resolvable:$true] %s24_s20 }
   0x3   :  { %s41_s17 = sshll.u32 %s1444_s16, 4  ;;  %s1445_s21 = smov 384   ;;  %s42_s17 = int_to_ptr.vmem [resolvable:$true] %s41_s17 }
   0x4   :  { %s1446_s22 = smov 24   ;;  %s1447_s23 = smov [#allocation2]  }
   0x5   :  { %47 = dma.hbm_to_vmem [thread:$0]  %s40_s15, 17664, %s42_s17, [#allocation5], %s1445_s21, %s1445_s21, %s1446_s22  }
   0x6   :  { %s26_s24 = sshll.u32 %s1447_s23, 4  ;;  %s1448_s25 = smov 128   ;;  %s27_s24 = int_to_ptr.vmem [resolvable:$true] %s26_s24 }
   0x7   :  { %s1449_s26 = smov 8   ;;  %s54_s28 = sshll.u32 %s1684_s5, 4  ;;  %s55_s28 = int_to_ptr.hbm [resolvable:$true] %s54_s28 }
   0x8   :  { %32 = dma.hbm_to_vmem [thread:$0]  %s25_s20, 5888, %s27_s24, [#allocation3], %s1448_s25, %s1448_s25, %s1449_s26  }
   0x9   :  { %s1450_s29 = smov [#allocation6]   ;;  %s69_s12 = sshll.u32 %s1686_s7, 4  ;;  %s70_s12 = int_to_ptr.hbm [resolvable:$true] %s69_s12 }
   0xa   :  { %s56_s30 = sshll.u32 %s1450_s29, 4  ;;  %s1451_s13 = smov [#allocation7]   ;;  %s57_s30 = int_to_ptr.vmem [resolvable:$true] %s56_s30 }
   0xb   :  { %62 = dma.hbm_to_vmem [thread:$0]  %s55_s28, 17664, %s57_s30, [#allocation5], %s1445_s21, %s1445_s21, %s1446_s22  }
   0xc   :  { %s71_s14 = sshll.u32 %s1451_s13, 4  ;;  %s72_s14 = int_to_ptr.vmem [resolvable:$true] %s71_s14 }
   0xd   :  { %77 = dma.hbm_to_vmem [thread:$0]  %s70_s12, 5888, %s72_s14, [#allocation8], %s1448_s25, %s1448_s25, %s1449_s26  }
   0xe   :  { %1438 = dma.done.wait [#allocation3], 5888  }
   0xf   :  { %1439 = vsyncadd [#allocation3], 4294961408 }
  0x10   :  { %1440 = dma.done.wait [#allocation5], 35328  }
  0x11   :  { %1441 = vsyncadd [#allocation5], 4294931968 }
  0x12   :  { %1442 = dma.done.wait [#allocation8], 5888  }
  0x13   :  { %1443 = vsyncadd [#allocation8], 4294961408  ;;  %v115_v0 = vld [vmem:[#allocation2 + $0x78] sm:$0xff]  ;;  %v114_v1 = vld [vmem:[#allocation2 + $0x70] sm:$0xff]  ;;  %vm157_vm0 = vcmask 916480   ;;  %vm220_vm1 = vcmask 1041408  }
  0x14   :  { %v131_v2 = vld [vmem:[#allocation2 + $0xf8] sm:$0xff]  ;;  %160 = vmatpush.msra.mxu0 %v115_v0  ;;  %v145_v3 = vld [vmem:[#allocation2 + $0x168] sm:$0xff]  ;;  %v130_v4 = vld [vmem:[#allocation2 + $0xf0] sm:$0xff]  ;;  %vm613_vm11 = vcmask 1043456   ;;  %vm965_vm12 = vcmask 910336  }
  0x15   :  { %180 = vmatpush.msra.mxu1 %v131_v2  ;;  %202 = vmatpush.msra.mxu2 %v145_v3  ;;  %v113_v5 = vld [vmem:[#allocation2 + $0x68] sm:$0xff]  ;;  %v144_v6 = vld [vmem:[#allocation2 + $0x160] sm:$0xff]  ;;  %v143_v8 = vld [vmem:[#allocation2 + $0x158] sm:$0xff] }
  0x16   :  { %v129_v7 = vld [vmem:[#allocation2 + $0xe8] sm:$0xff]  ;;  %161 = vmatpush.msra.mxu0 %v114_v1  ;;  %v112_v9 = vld [vmem:[#allocation2 + $0x60] sm:$0xff]  ;;  %v142_v11 = vld [vmem:[#allocation2 + $0x150] sm:$0xff] }
  0x17   :  { %181 = vmatpush.msra.mxu1 %v130_v4  ;;  %203 = vmatpush.msra.mxu2 %v144_v6  ;;  %v128_v10 = vld [vmem:[#allocation2 + $0xe0] sm:$0xff]  ;;  %v111_v12 = vld [vmem:[#allocation2 + $0x58] sm:$0xff]  ;;  %v141_v14 = vld [vmem:[#allocation2 + $0x148] sm:$0xff] }
  0x18   :  { %162 = vmatpush.msra.mxu0 %v113_v5  ;;  %v127_v13 = vld [vmem:[#allocation2 + $0xd8] sm:$0xff]  ;;  %v110_v15 = vld [vmem:[#allocation2 + $0x50] sm:$0xff]  ;;  %v140_v17 = vld [vmem:[#allocation2 + $0x140] sm:$0xff]  ;;  %v1452_v5 = vmov 0.0  }
  0x19   :  { %182 = vmatpush.msra.mxu1 %v129_v7  ;;  %204 = vmatpush.msra.mxu2 %v143_v8  ;;  %v126_v16 = vld [vmem:[#allocation2 + $0xd0] sm:$0xff]  ;;  %v109_v18 = vld [vmem:[#allocation2 + $0x48] sm:$0xff]  ;;  %v139_v20 = vld [vmem:[#allocation2 + $0x138] sm:$0xff]  ;;  %1274 = vst [vmem:[%s1689_s10] sm:$0xff] %v1452_v5 }
  0x1a   :  { %163 = vmatpush.msra.mxu0 %v112_v9  ;;  %v125_v19 = vld [vmem:[#allocation2 + $0xc8] sm:$0xff]  ;;  %v108_v21 = vld [vmem:[#allocation2 + $0x40] sm:$0xff]  ;;  %v138_v23 = vld [vmem:[#allocation2 + $0x130] sm:$0xff] }
  0x1b   :  { %183 = vmatpush.msra.mxu1 %v128_v10  ;;  %205 = vmatpush.msra.mxu2 %v142_v11  ;;  %v124_v22 = vld [vmem:[#allocation2 + $0xc0] sm:$0xff]  ;;  %v107_v24 = vld [vmem:[#allocation2 + $0x38] sm:$0xff]  ;;  %v137_v27 = vld [vmem:[#allocation2 + $0x128] sm:$0xff] }
  0x1c   :  { %164 = vmatpush.msra.mxu0 %v111_v12  ;;  %v123_v25 = vld [vmem:[#allocation2 + $0xb8] sm:$0xff]  ;;  %v106_v28 = vld [vmem:[#allocation2 + $0x30] sm:$0xff]  ;;  %v136_v30 = vld [vmem:[#allocation2 + $0x120] sm:$0xff] }
  0x1d   :  { %184 = vmatpush.msra.mxu1 %v127_v13  ;;  %206 = vmatpush.msra.mxu2 %v141_v14  ;;  %v1525_v26 = vld [vmem:[%s1679_s0] sm:$0x3f]  ;;  %v122_v29 = vld [vmem:[#allocation2 + $0xb0] sm:$0xff]  ;;  %v105_v31 = vld [vmem:[#allocation2 + $0x28] sm:$0xff] }
  0x1e   :  { %165 = vmatpush.msra.mxu0 %v110_v15  ;;  %151 = vst [vmem:[#allocation1] ss:$4 sm:$0xff] %v1525_v26  ;;  %v121_v32 = vld [vmem:[#allocation2 + $0xa8] sm:$0xff]  ;;  %v135_v33 = vld [vmem:[#allocation2 + $0x118] sm:$0xff]  ;;  %v104_v34 = vld [vmem:[#allocation2 + $0x20] sm:$0xff] }
  0x1f   :  { %185 = vmatpush.msra.mxu1 %v126_v16  ;;  %207 = vmatpush.msra.mxu2 %v140_v17  ;;  %v120_v35 = vld [vmem:[#allocation2 + $0xa0] sm:$0xff]  ;;  %v134_v36 = vld [vmem:[#allocation2 + $0x110] sm:$0xff]  ;;  %v103_v37 = vld [vmem:[#allocation2 + $0x18] sm:$0xff] }
  0x20   :  { %166 = vmatpush.msra.mxu0 %v109_v18  ;;  %v119_v38 = vld [vmem:[#allocation2 + $0x98] sm:$0xff]  ;;  %v133_v39 = vld [vmem:[#allocation2 + $0x108] sm:$0xff]  ;;  %v102_v40 = vld [vmem:[#allocation2 + $0x10] sm:$0xff] }
  0x21   :  { %186 = vmatpush.msra.mxu1 %v125_v19  ;;  %208 = vmatpush.msra.mxu2 %v139_v20  ;;  %v118_v41 = vld [vmem:[#allocation2 + $0x90] sm:$0xff]  ;;  %v132_v42 = vld [vmem:[#allocation2 + $0x100] sm:$0xff]  ;;  %v101_v43 = vld [vmem:[#allocation2 + $0x8] sm:$0xff] }
  0x22   :  { %167 = vmatpush.msra.mxu0 %v108_v21  ;;  %v117_v45 = vld [vmem:[#allocation2 + $0x88] sm:$0xff]  ;;  %v100_v46 = vld [vmem:[#allocation2] sm:$0xff]  ;;  %v1306_v50 = vld [vmem:[%s1681_s2] ss:$0 sm:$0xff] }
  0x23   :  { %187 = vmatpush.msra.mxu1 %v124_v22  ;;  %209 = vmatpush.msra.mxu2 %v138_v23  ;;  %v116_v48 = vld [vmem:[#allocation2 + $0x80] sm:$0xff]  ;;  %v314_v63 = vld [vmem:[#allocation4 + $0x168] sm:$0xff]  ;;  %v312_v4 = vld [vmem:[#allocation4 + $0x158] sm:$0xff] }
  0x24   :  { %168 = vmatpush.msra.mxu0 %v107_v24  ;;  %v362_v0 = vld [vmem:[#allocation4 + $0x2e8] sm:$0xff]  ;;  %v315_v1 = vld [vmem:[#allocation4 + $0x170] sm:$0xff]  ;;  %424 = vmatpush.msra.mxu3 %v314_v63  ;;  %v308_v6 = vld [vmem:[#allocation4 + $0x138] sm:$0xff] }
  0x25   :  { %188 = vmatpush.msra.mxu1 %v123_v25  ;;  %210 = vmatpush.msra.mxu2 %v137_v27  ;;  %v154_v44 = vld.sshfl [vmem:[#allocation1 + $0x10] sm:$0xff pattern:$0x73625140]  ;;  %v152_v47 = vld.sshfl [vmem:[#allocation1] sm:$0xff pattern:$0x73625140] }
  0x26   :  { %169 = vmatpush.msra.mxu0 %v106_v28  ;;  %v153_v49 = vld.sshfl [vmem:[#allocation1 + $0x8] sm:$0xff pattern:$0x73625140]  ;;  %v356_v7 = vld [vmem:[#allocation4 + $0x2b8] sm:$0xff]  ;;  %v309_v8 = vld [vmem:[#allocation4 + $0x140] sm:$0xff] }
  0x27   :  { %189 = vmatpush.msra.mxu1 %v122_v29  ;;  %211 = vmatpush.msra.mxu2 %v136_v30  ;;  %v311_v2 = vld [vmem:[#allocation4 + $0x150] sm:$0xff]  ;;  %v305_v9 = vld [vmem:[#allocation4 + $0x120] sm:$0xff]  ;;  %v404_v11 = vld [vmem:[#allocation4 + $0x438] sm:$0xff] }
  0x28   :  { %170 = vmatpush.msra.mxu0 %v105_v31  ;;  %v359_v3 = vld [vmem:[#allocation4 + $0x2d0] sm:$0xff]  ;;  %425 = vmatpush.msra.mxu3 %v311_v2  ;;  %v353_v10 = vld [vmem:[#allocation4 + $0x2a0] sm:$0xff]  ;;  %v306_v12 = vld [vmem:[#allocation4 + $0x128] sm:$0xff] }
  0x29   :  { %190 = vmatpush.msra.mxu1 %v121_v32  ;;  %212 = vmatpush.msra.mxu2 %v135_v33  ;;  %v302_v13 = vld [vmem:[#allocation4 + $0x108] sm:$0xff]  ;;  %v401_v15 = vld [vmem:[#allocation4 + $0x420] sm:$0xff]  ;;  %v303_v16 = vld [vmem:[#allocation4 + $0x110] sm:$0xff] }
  0x2a   :  { %171 = vmatpush.msra.mxu0 %v104_v34  ;;  %426 = vmatpush.msra.mxu3 %v308_v6  ;;  %v350_v14 = vld [vmem:[#allocation4 + $0x288] sm:$0xff]  ;;  %v299_v18 = vld [vmem:[#allocation4 + $0xf0] sm:$0xff]  ;;  %v300_v20 = vld [vmem:[#allocation4 + $0xf8] sm:$0xff] }
  0x2b   :  { %191 = vmatpush.msra.mxu1 %v120_v35  ;;  %213 = vmatpush.msra.mxu2 %v134_v36  ;;  %v398_v17 = vld [vmem:[#allocation4 + $0x408] sm:$0xff]  ;;  %v347_v19 = vld [vmem:[#allocation4 + $0x270] sm:$0xff]  ;;  %v296_v23 = vld [vmem:[#allocation4 + $0xd8] sm:$0xff] }
  0x2c   :  { %172 = vmatpush.msra.mxu0 %v103_v37  ;;  %427 = vmatpush.msra.mxu3 %v305_v9  ;;  %v395_v21 = vld [vmem:[#allocation4 + $0x3f0] sm:$0xff]  ;;  %v344_v24 = vld [vmem:[#allocation4 + $0x258] sm:$0xff]  ;;  %v297_v25 = vld [vmem:[#allocation4 + $0xe0] sm:$0xff] }
  0x2d   :  { %192 = vmatpush.msra.mxu1 %v119_v38  ;;  %214 = vmatpush.msra.mxu2 %v133_v39  ;;  %v392_v27 = vld [vmem:[#allocation4 + $0x3d8] sm:$0xff]  ;;  %v293_v28 = vld [vmem:[#allocation4 + $0xc0] sm:$0xff]  ;;  %v294_v30 = vld [vmem:[#allocation4 + $0xc8] sm:$0xff] }
  0x2e   :  { %173 = vmatpush.msra.mxu0 %v102_v40  ;;  %428 = vmatpush.msra.mxu3 %v302_v13  ;;  %v341_v29 = vld [vmem:[#allocation4 + $0x240] sm:$0xff]  ;;  %v290_v32 = vld [vmem:[#allocation4 + $0xa8] sm:$0xff]  ;;  %v291_v34 = vld [vmem:[#allocation4 + $0xb0] sm:$0xff]  ;;  %v1201_v40 = vlaneseq }
  0x2f   :  { %193 = vmatpush.msra.mxu1 %v118_v41  ;;  %215 = vmatpush.msra.mxu2 %v132_v42  ;;  %v389_v31 = vld [vmem:[#allocation4 + $0x3c0] sm:$0xff]  ;;  %v338_v33 = vld [vmem:[#allocation4 + $0x228] sm:$0xff]  ;;  %v287_v35 = vld [vmem:[#allocation4 + $0x90] sm:$0xff] }
  0x30   :  { %174 = vmatpush.msra.mxu0 %v101_v43  ;;  %1285 = vmatmul.msk.f32.vlgmr.msra.gmra.mxu2 %vm157_vm0, %v154_v44  ;;  %v335_v36 = vld [vmem:[#allocation4 + $0x210] sm:$0xff]  ;;  %v288_v38 = vld [vmem:[#allocation4 + $0x98] sm:$0xff]  ;;  %v326_v63 = vld [vmem:[#allocation4 + $0x1c8] sm:$0xff] }
  0x31   :  { %194 = vmatpush.msra.mxu1 %v117_v45  ;;  %444 = vmatpush.msrb.mxu2 %v362_v0  ;;  %v1541_v45 = vand.u32 127, %v1201_v40  ;;  %v380_v0 = vld [vmem:[#allocation4 + $0x378] sm:$0xff]  ;;  %v275_v2 = vld [vmem:[#allocation4 + $0x30] sm:$0xff]  ;;  %v374_v9 = vld [vmem:[#allocation4 + $0x348] sm:$0xff] }
  0x32   :  { %175 = vmatpush.msra.mxu0 %v100_v46  ;;  %429 = vmatpush.msra.mxu3 %v299_v18  ;;  %v276_v6 = vld [vmem:[#allocation4 + $0x38] sm:$0xff]  ;;  %v371_v13 = vld [vmem:[#allocation4 + $0x330] sm:$0xff]  ;;  %v345_v40 = vld [vmem:[#allocation4 + $0x260] sm:$0xff] }
  0x33   :  { %176 = vmatmul.f32.vlgmr.msra.gmra.mxu0 %v152_v47  ;;  %195 = vmatpush.msra.mxu1 %v116_v48  ;;  %vm1203_vm6 = vcmp.lt.s32.totalorder %v1541_v45, 2  ;;  %v368_v18 = vld [vmem:[#allocation4 + $0x318] sm:$0xff] }
  0x34   :  { %196 = vmatmul.f32.vlgmr.msra.gmra.mxu1 %v153_v49  ;;  %445 = vmatpush.msrb.mxu2 %v359_v3  ;;  %v323_v3 = vld [vmem:[#allocation4 + $0x1b0] sm:$0xff] }
  0x35   :  { %484 = vmatpush.msrb.mxu1 %v315_v1  ;;  %466 = vmatpush.msrb.mxu0 %v404_v11  ;;  %v279_v1 = vld [vmem:[#allocation4 + $0x50] sm:$0xff]  ;;  %v269_v11 = vld [vmem:[#allocation4] sm:$0xff] }
  0x36   :  { %446 = vmatpush.msrb.mxu2 %v356_v7  ;;  %430 = vmatpush.msra.mxu3 %v296_v23  ;;  %v272_v7 = vld [vmem:[#allocation4 + $0x18] sm:$0xff]  ;;  %v357_v23 = vld [vmem:[#allocation4 + $0x2c0] sm:$0xff] }
  0x37   :  { %485 = vmatpush.msrb.mxu1 %v312_v4  ;;  %467 = vmatpush.msrb.mxu0 %v401_v15  ;;  %v377_v4 = vld [vmem:[#allocation4 + $0x360] sm:$0xff]  ;;  %v363_v15 = vld [vmem:[#allocation4 + $0x2f0] sm:$0xff] }
  0x38   :  { %447 = vmatpush.msrb.mxu2 %v353_v10  ;;  %431 = vmatpush.msra.mxu3 %v293_v28  ;;  %v273_v10 = vld [vmem:[#allocation4 + $0x20] sm:$0xff]  ;;  %v354_v28 = vld [vmem:[#allocation4 + $0x2a8] sm:$0xff] }
  0x39   :  { %486 = vmatpush.msrb.mxu1 %v309_v8  ;;  %468 = vmatpush.msrb.mxu0 %v398_v17  ;;  %v320_v8 = vld [vmem:[#allocation4 + $0x198] sm:$0xff] }
  0x3a   :  { %448 = vmatpush.msrb.mxu2 %v350_v14  ;;  %432 = vmatpush.msra.mxu3 %v290_v32  ;;  %v270_v14 = vld [vmem:[#allocation4 + $0x8] sm:$0xff]  ;;  %v364_v17 = vld [vmem:[#allocation4 + $0x2f8] sm:$0xff]  ;;  %v351_v32 = vld [vmem:[#allocation4 + $0x290] sm:$0xff] }
  0x3b   :  { %487 = vmatpush.msrb.mxu1 %v306_v12  ;;  %469 = vmatpush.msrb.mxu0 %v395_v21  ;;  %v317_v12 = vld [vmem:[#allocation4 + $0x180] sm:$0xff] }
  0x3c   :  { %449 = vmatpush.msrb.mxu2 %v347_v19  ;;  %433 = vmatpush.msra.mxu3 %v287_v35  ;;  %v360_v19 = vld [vmem:[#allocation4 + $0x2d8] sm:$0xff]  ;;  %v361_v21 = vld [vmem:[#allocation4 + $0x2e0] sm:$0xff] }
  0x3d   :  { %488 = vmatpush.msrb.mxu1 %v303_v16  ;;  %470 = vmatpush.msrb.mxu0 %v392_v27  ;;  %v316_v16 = vld [vmem:[#allocation4 + $0x178] sm:$0xff]  ;;  %v358_v27 = vld [vmem:[#allocation4 + $0x2c8] sm:$0xff] }
  0x3e   :  { %450 = vmatpush.msrb.mxu2 %v344_v24  ;;  %v405_v24 = vld [vmem:[#allocation4 + $0x440] sm:$0xff]  ;;  %v352_v35 = vld [vmem:[#allocation4 + $0x298] sm:$0xff] }
  0x3f   :  { %489 = vmatpush.msrb.mxu1 %v300_v20  ;;  %471 = vmatpush.msrb.mxu0 %v389_v31  ;;  %v313_v20 = vld [vmem:[#allocation4 + $0x160] sm:$0xff]  ;;  %v355_v31 = vld [vmem:[#allocation4 + $0x2b0] sm:$0xff] }
  0x40   :  { %451 = vmatpush.msrb.mxu2 %v341_v29  ;;  %v402_v29 = vld [vmem:[#allocation4 + $0x428] sm:$0xff] }
  0x41   :  { %490 = vmatpush.msrb.mxu1 %v297_v25  ;;  %v310_v25 = vld [vmem:[#allocation4 + $0x148] sm:$0xff] }
  0x42   :  { %452 = vmatpush.msrb.mxu2 %v338_v33  ;;  %v399_v33 = vld [vmem:[#allocation4 + $0x410] sm:$0xff] }
  0x43   :  { %491 = vmatpush.msrb.mxu1 %v294_v30  ;;  %v307_v30 = vld [vmem:[#allocation4 + $0x130] sm:$0xff] }
  0x44   :  { %453 = vmatpush.msrb.mxu2 %v335_v36  ;;  %v348_v36 = vld [vmem:[#allocation4 + $0x278] sm:$0xff] }
  0x45   :  { %492 = vmatpush.msrb.mxu1 %v291_v34  ;;  %v304_v34 = vld [vmem:[#allocation4 + $0x118] sm:$0xff] }
  0x47   :  { %493 = vmatpush.msrb.mxu1 %v288_v38  ;;  %v301_v38 = vld [vmem:[#allocation4 + $0x100] sm:$0xff] }
  0xb0   :  { %v177_v51 = vpop.f32.mrf.mxu0 }
  0xb1   :  { %v178_v52 = vadd.f32 %v1306_v50, %v177_v51  ;;  %v197_v53 = vpop.f32.mrf.mxu1 }
  0xb3   :  { %v198_v54 = vadd.f32 %v197_v53, %v178_v52  ;;  %v217_v55 = vpop.f32.mrf.mxu2 }
  0xb5   :  { %v218_v56 = vadd.f32 %v217_v55, %v198_v54  ;;  %v284_v54 = vld [vmem:[#allocation4 + $0x78] sm:$0xff] }
  0xb6   :  { %v332_v55 = vld [vmem:[#allocation4 + $0x1f8] sm:$0xff]  ;;  %434 = vmatpush.msra.mxu3 %v284_v54 }
  0xb7   :  { %v221_v57 = vsel %vm220_vm1, %v218_v56, -inf  ;;  %454 = vmatpush.msrb.mxu2 %v332_v55  ;;  %v336_v54 = vld [vmem:[#allocation4 + $0x218] sm:$0xff] }
  0xb8   :  { %222 = vmax.xlane.f32.xlu0 %v221_v57  ;;  %v285_v57 = vld [vmem:[#allocation4 + $0x80] sm:$0xff]  ;;  %v384_v55 = vld [vmem:[#allocation4 + $0x398] sm:$0xff] }
  0xb9   :  { %494 = vmatpush.msrb.mxu1 %v285_v57  ;;  %v337_v57 = vld [vmem:[#allocation4 + $0x220] sm:$0xff] }
 0x12b   :  { %v223_v58 = vpop.xlane.xlu0 %222 }
 0x12c   :  { %v224_v59 = vsub.f32 %v218_v56, %v223_v58  ;;  %v386_v56 = vld [vmem:[#allocation4 + $0x3a8] sm:$0xff]  ;;  %v281_v58 = vld [vmem:[#allocation4 + $0x60] sm:$0xff] }
 0x12d   :  { %472 = vmatpush.msrb.mxu0 %v386_v56  ;;  %435 = vmatpush.msra.mxu3 %v281_v58  ;;  %v289_v56 = vld [vmem:[#allocation4 + $0xa0] sm:$0xff] }
 0x12e   :  { %v225_v60 = vmul.f32 1.442695, %v224_v59  ;;  %v329_v59 = vld [vmem:[#allocation4 + $0x1e0] sm:$0xff] }
 0x12f   :  { %455 = vmatpush.msrb.mxu2 %v329_v59  ;;  %v333_v58 = vld [vmem:[#allocation4 + $0x200] sm:$0xff] }
 0x130   :  { %1308 = vpow2.f32 %v225_v60  ;;  %v383_v60 = vld [vmem:[#allocation4 + $0x390] sm:$0xff]  ;;  %v381_v59 = vld [vmem:[#allocation4 + $0x380] sm:$0xff] }
 0x131   :  { %473 = vmatpush.msrb.mxu0 %v383_v60  ;;  %456 = vmatpush.msrb.mxu2 %v326_v63  ;;  %v286_v60 = vld [vmem:[#allocation4 + $0x88] sm:$0xff] }
 0x133   :  { %474 = vmatpush.msrb.mxu0 %v380_v0  ;;  %457 = vmatpush.msrb.mxu2 %v323_v3  ;;  %v330_v0 = vld [vmem:[#allocation4 + $0x1e8] sm:$0xff]  ;;  %v331_v3 = vld [vmem:[#allocation4 + $0x1f0] sm:$0xff] }
 0x135   :  { %475 = vmatpush.msrb.mxu0 %v377_v4  ;;  %458 = vmatpush.msrb.mxu2 %v320_v8  ;;  %v280_v8 = vld [vmem:[#allocation4 + $0x58] sm:$0xff] }
 0x136   :  { %v1533_v61 = vpop.eup %1308 }
 0x137   :  { %v227_v62 = vsel %vm220_vm1, %v1533_v61, 0.0  ;;  %476 = vmatpush.msrb.mxu0 %v374_v9  ;;  %459 = vmatpush.msrb.mxu2 %v317_v12  ;;  %v328_v9 = vld [vmem:[#allocation4 + $0x1d8] sm:$0xff]  ;;  %v277_v12 = vld [vmem:[#allocation4 + $0x40] sm:$0xff] }
 0x138   :  { %228 = vadd.xlane.f32.xlu0 %v227_v62  ;;  %v278_v62 = vld [vmem:[#allocation4 + $0x48] sm:$0xff] }
 0x139   :  { %436 = vmatpush.msra.mxu3 %v278_v62  ;;  %477 = vmatpush.msrb.mxu0 %v371_v13  ;;  %v334_v62 = vld [vmem:[#allocation4 + $0x208] sm:$0xff]  ;;  %v325_v13 = vld [vmem:[#allocation4 + $0x1c0] sm:$0xff] }
 0x13a   :  { %544 = vmatpush.msra.mxu2 %v316_v16  ;;  %v274_v16 = vld [vmem:[#allocation4 + $0x28] sm:$0xff] }
 0x13b   :  { %437 = vmatpush.msra.mxu3 %v275_v2  ;;  %478 = vmatpush.msrb.mxu0 %v368_v18  ;;  %v283_v2 = vld [vmem:[#allocation4 + $0x70] sm:$0xff]  ;;  %v318_v18 = vld [vmem:[#allocation4 + $0x188] sm:$0xff] }
 0x13c   :  { %545 = vmatpush.msra.mxu2 %v313_v20  ;;  %v271_v20 = vld [vmem:[#allocation4 + $0x10] sm:$0xff] }
 0x13d   :  { %438 = vmatpush.msra.mxu3 %v272_v7  ;;  %v375_v7 = vld [vmem:[#allocation4 + $0x350] sm:$0xff] }
 0x13e   :  { %546 = vmatpush.msra.mxu2 %v310_v25 }
 0x13f   :  { %439 = vmatpush.msra.mxu3 %v269_v11  ;;  %v372_v11 = vld [vmem:[#allocation4 + $0x338] sm:$0xff] }
 0x140   :  { %547 = vmatpush.msra.mxu2 %v307_v30 }
 0x141   :  { %504 = vmatpush.msrb.mxu3 %v363_v15  ;;  %v369_v15 = vld [vmem:[#allocation4 + $0x320] sm:$0xff] }
 0x142   :  { %548 = vmatpush.msra.mxu2 %v304_v34 }
 0x143   :  { %505 = vmatpush.msrb.mxu3 %v360_v19  ;;  %v366_v19 = vld [vmem:[#allocation4 + $0x308] sm:$0xff] }
 0x144   :  { %549 = vmatpush.msra.mxu2 %v301_v38  ;;  %v662_v38 = vld [vmem:[#allocation6 + $0x168] sm:$0xff] }
 0x145   :  { %506 = vmatpush.msrb.mxu3 %v357_v23 }
 0x147   :  { %507 = vmatpush.msrb.mxu3 %v354_v28 }
 0x149   :  { %508 = vmatpush.msrb.mxu3 %v351_v32 }
 0x14b   :  { %509 = vmatpush.msrb.mxu3 %v348_v36 }
 0x14d   :  { %510 = vmatpush.msrb.mxu3 %v345_v40 }
 0x1ab   :  { %v229_v22 = vpop.xlane.xlu0 %228 }
 0x1ac   :  { %1310 = vrcp.f32 %v229_v22  ;;  %v241_v42 = vand.u32 2147483648, %v229_v22  ;;  %v239_v44 = vand.u32 2147483647, %v229_v22  ;;  %vm235_vm3 = vweird.f32 %v229_v22 }
 0x1ae   :  { %v242_v47 = vor.u32 1.1754944e-38, %v241_v42  ;;  %vm240_vm5 = vcmp.eq.f32.partialorder %v239_v44, 8.507059e+37  ;;  %v298_v42 = vld [vmem:[#allocation4 + $0xe8] sm:$0xff] }
 0x1af   :  { %v342_v44 = vld [vmem:[#allocation4 + $0x248] sm:$0xff]  ;;  %550 = vmatpush.msra.mxu2 %v298_v42  ;;  %v710_v42 = vld [vmem:[#allocation6 + $0x2e8] sm:$0xff] }
 0x1b0   :  { %511 = vmatpush.msrb.mxu3 %v342_v44  ;;  %v659_v44 = vld [vmem:[#allocation6 + $0x150] sm:$0xff] }
 0x1b2   :  { %v1311_v37 = vpop.eup %1310 }
 0x1b3   :  { %v231_v39 = vmul.f32 %v1311_v37, %v229_v22  ;;  %vm236_vm2 = vweird.f32 %v1311_v37  ;;  %v365_v22 = vld [vmem:[#allocation4 + $0x300] sm:$0xff] }
 0x1b4   :  { %vm237_vm4 = vmor %vm235_vm3, %vm236_vm2  ;;  %479 = vmatpush.msrb.mxu0 %v365_v22 }
 0x1b5   :  { %v232_v41 = vsub.f32 1.0, %v231_v39  ;;  %v349_v39 = vld [vmem:[#allocation4 + $0x280] sm:$0xff] }
 0x1b6   :  { %526 = vmatpush.msra.mxu0 %v405_v24 }
 0x1b7   :  { %v233_v43 = vmul.f32 %v1311_v37, %v232_v41  ;;  %v393_v41 = vld [vmem:[#allocation4 + $0x3e0] sm:$0xff] }
 0x1b8   :  { %527 = vmatpush.msra.mxu0 %v402_v29 }
 0x1b9   :  { %v234_v46 = vadd.f32 %v1311_v37, %v233_v43  ;;  %v346_v43 = vld [vmem:[#allocation4 + $0x268] sm:$0xff] }
 0x1ba   :  { %528 = vmatpush.msra.mxu0 %v399_v33 }
 0x1bb   :  { %v238_v48 = vsel %vm237_vm4, %v1311_v37, %v234_v46  ;;  %v396_v37 = vld [vmem:[#allocation4 + $0x3f8] sm:$0xff]  ;;  %v390_v46 = vld [vmem:[#allocation4 + $0x3c8] sm:$0xff] }
 0x1bc   :  { %v243_v49 = vsel %vm240_vm5, %v242_v47, %v238_v48  ;;  %529 = vmatpush.msra.mxu0 %v396_v37  ;;  %v295_v47 = vld [vmem:[#allocation4 + $0xd0] sm:$0xff]  ;;  %v406_v37 = vld [vmem:[#allocation4 + $0x448] sm:$0xff] }
 0x1bd   :  { %v244_v50 = vmul.f32 %v1533_v61, %v243_v49  ;;  %v282_v61 = vld [vmem:[#allocation4 + $0x68] sm:$0xff]  ;;  %v343_v48 = vld [vmem:[#allocation4 + $0x250] sm:$0xff]  ;;  %551 = vmatpush.msra.mxu2 %v295_v47 }
 0x1be   :  { %495 = vmatpush.msrb.mxu1 %v282_v61  ;;  %530 = vmatpush.msra.mxu0 %v393_v41  ;;  %v339_v49 = vld [vmem:[#allocation4 + $0x230] sm:$0xff]  ;;  %v660_v47 = vld [vmem:[#allocation6 + $0x158] sm:$0xff] }
 0x1bf   :  { %v245_v51 = vsel %vm220_vm1, %v244_v50, -inf  ;;  %v1548_v52 = vsel %vm1203_vm6, %v244_v50, -1e+30  ;;  %v387_v50 = vld [vmem:[#allocation4 + $0x3b0] sm:$0xff]  ;;  %512 = vmatpush.msrb.mxu3 %v339_v49  ;;  %v656_v49 = vld [vmem:[#allocation6 + $0x138] sm:$0xff] }
 0x1c0   :  { %246 = vmax.xlane.f32.xlu1 %v245_v51  ;;  %v1231_v53 = vsel %vm220_vm1, %v1548_v52, -inf  ;;  %496 = vmatpush.msrb.mxu1 %v279_v1  ;;  %v292_v51 = vld [vmem:[#allocation4 + $0xb8] sm:$0xff]  ;;  %v378_v1 = vld [vmem:[#allocation4 + $0x368] sm:$0xff] }
 0x1c1   :  { %1232 = vmax.xlane.f32.xlu0 %v1231_v53  ;;  %531 = vmatpush.msra.mxu0 %v390_v46  ;;  %v340_v53 = vld [vmem:[#allocation4 + $0x238] sm:$0xff]  ;;  %v707_v46 = vld [vmem:[#allocation6 + $0x2d0] sm:$0xff] }
 0x1c2   :  { %497 = vmatpush.msrb.mxu1 %v276_v6  ;;  %552 = vmatpush.msra.mxu2 %v292_v51  ;;  %v327_v6 = vld [vmem:[#allocation4 + $0x1d0] sm:$0xff] }
 0x1c3   :  { %532 = vmatpush.msra.mxu0 %v387_v50  ;;  %513 = vmatpush.msrb.mxu3 %v336_v54  ;;  %v704_v50 = vld [vmem:[#allocation6 + $0x2b8] sm:$0xff]  ;;  %v657_v51 = vld [vmem:[#allocation6 + $0x140] sm:$0xff] }
 0x1c4   :  { %498 = vmatpush.msrb.mxu1 %v273_v10  ;;  %553 = vmatpush.msra.mxu2 %v289_v56  ;;  %v324_v10 = vld [vmem:[#allocation4 + $0x1b8] sm:$0xff]  ;;  %v653_v54 = vld [vmem:[#allocation6 + $0x120] sm:$0xff] }
 0x1c5   :  { %533 = vmatpush.msra.mxu0 %v384_v55  ;;  %514 = vmatpush.msrb.mxu3 %v333_v58  ;;  %v701_v55 = vld [vmem:[#allocation6 + $0x2a0] sm:$0xff]  ;;  %v654_v56 = vld [vmem:[#allocation6 + $0x128] sm:$0xff] }
 0x1c6   :  { %499 = vmatpush.msrb.mxu1 %v270_v14  ;;  %554 = vmatpush.msra.mxu2 %v286_v60  ;;  %v321_v14 = vld [vmem:[#allocation4 + $0x1a0] sm:$0xff]  ;;  %v650_v58 = vld [vmem:[#allocation6 + $0x108] sm:$0xff] }
 0x1c7   :  { %534 = vmatpush.msra.mxu0 %v381_v59  ;;  %515 = vmatpush.msrb.mxu3 %v330_v0  ;;  %v698_v59 = vld [vmem:[#allocation6 + $0x288] sm:$0xff]  ;;  %v651_v60 = vld [vmem:[#allocation6 + $0x110] sm:$0xff]  ;;  %v648_v0 = vld [vmem:[#allocation6 + $0xf8] sm:$0xff] }
 0x1c8   :  { %564 = vmatpush.msra.mxu1 %v364_v17  ;;  %555 = vmatpush.msra.mxu2 %v283_v2  ;;  %v322_v17 = vld [vmem:[#allocation4 + $0x1a8] sm:$0xff] }
 0x1c9   :  { %535 = vmatpush.msra.mxu0 %v378_v1  ;;  %516 = vmatpush.msrb.mxu3 %v327_v6  ;;  %v388_v1 = vld [vmem:[#allocation4 + $0x3b8] sm:$0xff]  ;;  %v644_v2 = vld [vmem:[#allocation6 + $0xd8] sm:$0xff]  ;;  %v385_v6 = vld [vmem:[#allocation4 + $0x3a0] sm:$0xff] }
 0x1ca   :  { %565 = vmatpush.msra.mxu1 %v361_v21  ;;  %556 = vmatpush.msra.mxu2 %v280_v8  ;;  %v319_v21 = vld [vmem:[#allocation4 + $0x190] sm:$0xff] }
 0x1cb   :  { %536 = vmatpush.msra.mxu0 %v375_v7  ;;  %517 = vmatpush.msrb.mxu3 %v324_v10  ;;  %v641_v7 = vld [vmem:[#allocation6 + $0xc0] sm:$0xff]  ;;  %v382_v10 = vld [vmem:[#allocation4 + $0x388] sm:$0xff] }
 0x1cc   :  { %566 = vmatpush.msra.mxu1 %v358_v27  ;;  %557 = vmatpush.msra.mxu2 %v277_v12  ;;  %v689_v8 = vld [vmem:[#allocation6 + $0x240] sm:$0xff]  ;;  %v686_v12 = vld [vmem:[#allocation6 + $0x228] sm:$0xff] }
 0x1cd   :  { %537 = vmatpush.msra.mxu0 %v372_v11  ;;  %518 = vmatpush.msrb.mxu3 %v321_v14  ;;  %v638_v11 = vld [vmem:[#allocation6 + $0xa8] sm:$0xff]  ;;  %v379_v14 = vld [vmem:[#allocation4 + $0x370] sm:$0xff] }
 0x1ce   :  { %567 = vmatpush.msra.mxu1 %v355_v31  ;;  %558 = vmatpush.msra.mxu2 %v274_v16  ;;  %v683_v16 = vld [vmem:[#allocation6 + $0x210] sm:$0xff] }
 0x1cf   :  { %538 = vmatpush.msra.mxu0 %v369_v15  ;;  %519 = vmatpush.msrb.mxu3 %v318_v18  ;;  %v635_v15 = vld [vmem:[#allocation6 + $0x90] sm:$0xff]  ;;  %v376_v18 = vld [vmem:[#allocation4 + $0x358] sm:$0xff] }
 0x1d0   :  { %568 = vmatpush.msra.mxu1 %v352_v35  ;;  %559 = vmatpush.msra.mxu2 %v271_v20  ;;  %v680_v20 = vld [vmem:[#allocation6 + $0x1f8] sm:$0xff] }
 0x1d1   :  { %539 = vmatpush.msra.mxu0 %v366_v19  ;;  %v632_v19 = vld [vmem:[#allocation6 + $0x78] sm:$0xff] }
 0x1d2   :  { %569 = vmatpush.msra.mxu1 %v349_v39 }
 0x1d4   :  { %570 = vmatpush.msra.mxu1 %v346_v43  ;;  %v663_v43 = vld [vmem:[#allocation6 + $0x170] sm:$0xff] }
 0x1d6   :  { %571 = vmatpush.msra.mxu1 %v343_v48  ;;  %v400_v48 = vld [vmem:[#allocation4 + $0x418] sm:$0xff] }
 0x1d8   :  { %572 = vmatpush.msra.mxu1 %v340_v53  ;;  %v397_v53 = vld [vmem:[#allocation4 + $0x400] sm:$0xff] }
 0x1da   :  { %573 = vmatpush.msra.mxu1 %v337_v57  ;;  %v394_v57 = vld [vmem:[#allocation4 + $0x3e8] sm:$0xff] }
 0x1dc   :  { %574 = vmatpush.msra.mxu1 %v334_v62  ;;  %v647_v62 = vld [vmem:[#allocation6 + $0xf0] sm:$0xff] }
 0x1de   :  { %575 = vmatpush.msra.mxu1 %v331_v3  ;;  %v692_v3 = vld [vmem:[#allocation6 + $0x258] sm:$0xff] }
 0x1e0   :  { %576 = vmatpush.msra.mxu1 %v328_v9  ;;  %v642_v9 = vld [vmem:[#allocation6 + $0xc8] sm:$0xff] }
 0x1e2   :  { %577 = vmatpush.msra.mxu1 %v325_v13  ;;  %v639_v13 = vld [vmem:[#allocation6 + $0xb0] sm:$0xff] }
 0x1e4   :  { %578 = vmatpush.msra.mxu1 %v322_v17  ;;  %v636_v17 = vld [vmem:[#allocation6 + $0x98] sm:$0xff] }
 0x1e6   :  { %579 = vmatpush.msra.mxu1 %v319_v21  ;;  %v633_v21 = vld [vmem:[#allocation6 + $0x80] sm:$0xff] }
 0x233   :  { %v247_v61 = vpop.xlane.xlu1 %246 }
 0x234   :  { %v248_v63 = vsub.f32 0.0, %v247_v61  ;;  %1276 = vst [vmem:[%s1689_s10 + $0x2] sm:$0x3] %v247_v61  ;;  %v391_v61 = vld [vmem:[#allocation4 + $0x3d0] sm:$0xff] }
 0x236   :  { %v249_v4 = vmul.f32 1.442695, %v248_v63  ;;  %v695_v63 = vld [vmem:[#allocation6 + $0x270] sm:$0xff] }
 0x238   :  { %1312 = vpow2.f32 %v249_v4  ;;  %v645_v4 = vld [vmem:[#allocation6 + $0xe0] sm:$0xff] }
 0x23e   :  { %v1313_v22 = vpop.eup %1312 }
 0x23f   :  { %v251_v23 = vadd.f32 1.0, %v1313_v22  ;;  %v373_v22 = vld [vmem:[#allocation4 + $0x340] sm:$0xff] }
 0x241   :  { %1314 = vrcp.f32 %v251_v23  ;;  %v263_v28 = vand.u32 2147483648, %v251_v23  ;;  %v261_v30 = vand.u32 2147483647, %v251_v23  ;;  %vm257_vm8 = vweird.f32 %v251_v23 }
 0x243   :  { %v264_v32 = vor.u32 1.1754944e-38, %v263_v28  ;;  %vm262_vm10 = vcmp.eq.f32.partialorder %v261_v30, 8.507059e+37  ;;  %v626_v28 = vld [vmem:[#allocation6 + $0x48] sm:$0xff]  ;;  %v627_v30 = vld [vmem:[#allocation6 + $0x50] sm:$0xff] }
 0x247   :  { %v1315_v24 = vpop.eup %1314 }
 0x248   :  { %v253_v25 = vmul.f32 %v1315_v24, %v251_v23  ;;  %vm258_vm7 = vweird.f32 %v1315_v24  ;;  %v629_v23 = vld [vmem:[#allocation6 + $0x60] sm:$0xff] }
 0x249   :  { %vm259_vm9 = vmor %vm257_vm8, %vm258_vm7 }
 0x24a   :  { %v254_v27 = vsub.f32 1.0, %v253_v25  ;;  %v630_v25 = vld [vmem:[#allocation6 + $0x68] sm:$0xff] }
 0x24c   :  { %v255_v29 = vmul.f32 %v1315_v24, %v254_v27  ;;  %v370_v27 = vld [vmem:[#allocation4 + $0x328] sm:$0xff] }
 0x24e   :  { %v256_v31 = vadd.f32 %v1315_v24, %v255_v29  ;;  %v674_v29 = vld [vmem:[#allocation6 + $0x1c8] sm:$0xff] }
 0x250   :  { %v260_v33 = vsel %vm259_vm9, %v1315_v24, %v256_v31  ;;  %v677_v24 = vld [vmem:[#allocation6 + $0x1e0] sm:$0xff] }
 0x251   :  { %v265_v34 = vsel %vm262_vm10, %v264_v32, %v260_v33  ;;  %v367_v31 = vld [vmem:[#allocation4 + $0x310] sm:$0xff]  ;;  %v623_v32 = vld [vmem:[#allocation6 + $0x30] sm:$0xff] }
 0x252   :  { %v267_v35 = vperm.slane %v265_v34, 0  ;;  %v671_v33 = vld [vmem:[#allocation6 + $0x1b0] sm:$0xff]  ;;  %v624_v34 = vld [vmem:[#allocation6 + $0x38] sm:$0xff] }
 0x254   :  { %v1556_v36 = vmul.f32 %v267_v35, %v1525_v26  ;;  %v403_v26 = vld [vmem:[#allocation4 + $0x430] sm:$0xff]  ;;  %v620_v35 = vld [vmem:[#allocation6 + $0x18] sm:$0xff] }
 0x256   :  { %416 = vst [vmem:[#allocation1] ss:$4 sm:$0xff] %v1556_v36 }
 0x25d   :  { %v417_v39 = vld.sshfl [vmem:[#allocation1] sm:$0xff pattern:$0x73625140]  ;;  %v418_v40 = vld.sshfl [vmem:[#allocation1 + $0x8] sm:$0xff pattern:$0x73625140] }
 0x25e   :  { %440 = vmatmul.f32.vlgmr.msra.gmra.mxu3 %v417_v39  ;;  %460 = vmatmul.f32.vlgmr.msrb.gmra.mxu2 %v418_v40  ;;  %v1559_v41 = vld.sshfl [vmem:[#allocation1 + $0x10] sm:$0xff pattern:$0x73625140] }
 0x25f   :  { %1286 = vmatmul.msk.f32.vlgmr.msrb.gmra.mxu0 %vm157_vm0, %v1559_v41  ;;  %763 = vst [vmem:[#allocation1] ss:$4 sm:$0xff] %v1556_v36  ;;  %500 = vmatmul.f32.vlgmr.msrb.gmra.mxu1 %v417_v39 }
 0x260   :  { %586 = vmatpush.msra.mxu3 %v406_v37  ;;  %771 = vmatpush.msrb.mxu0 %v662_v38  ;;  %v752_v37 = vld [vmem:[#allocation6 + $0x438] sm:$0xff] }
 0x261   :  { %791 = vmatpush.msrb.mxu2 %v710_v42  ;;  %831 = vmatpush.msrb.mxu1 %v663_v43  ;;  %v668_v38 = vld [vmem:[#allocation6 + $0x198] sm:$0xff]  ;;  %v749_v42 = vld [vmem:[#allocation6 + $0x420] sm:$0xff] }
 0x262   :  { %587 = vmatpush.msra.mxu3 %v403_v26  ;;  %772 = vmatpush.msrb.mxu0 %v659_v44  ;;  %v665_v43 = vld [vmem:[#allocation6 + $0x180] sm:$0xff]  ;;  %v618_v26 = vld [vmem:[#allocation6 + $0x8] sm:$0xff] }
 0x263   :  { %792 = vmatpush.msrb.mxu2 %v707_v46  ;;  %832 = vmatpush.msrb.mxu1 %v660_v47  ;;  %v746_v44 = vld [vmem:[#allocation6 + $0x408] sm:$0xff]  ;;  %v711_v47 = vld [vmem:[#allocation6 + $0x2f0] sm:$0xff] }
 0x264   :  { %588 = vmatpush.msra.mxu3 %v400_v48  ;;  %773 = vmatpush.msrb.mxu0 %v656_v49  ;;  %v712_v49 = vld [vmem:[#allocation6 + $0x2f8] sm:$0xff] }
 0x265   :  { %793 = vmatpush.msrb.mxu2 %v704_v50  ;;  %833 = vmatpush.msrb.mxu1 %v657_v51  ;;  %v743_v50 = vld [vmem:[#allocation6 + $0x3f0] sm:$0xff]  ;;  %v708_v51 = vld [vmem:[#allocation6 + $0x2d8] sm:$0xff] }
 0x266   :  { %589 = vmatpush.msra.mxu3 %v397_v53  ;;  %774 = vmatpush.msrb.mxu0 %v653_v54  ;;  %v1568_v46 = vld.sshfl [vmem:[#allocation1] sm:$0xff pattern:$0x73625140]  ;;  %v1571_v48 = vld.sshfl [vmem:[#allocation1 + $0x8] sm:$0xff pattern:$0x73625140] }
 0x267   :  { %794 = vmatpush.msrb.mxu2 %v701_v55  ;;  %834 = vmatpush.msrb.mxu1 %v654_v56  ;;  %v661_v53 = vld [vmem:[#allocation6 + $0x160] sm:$0xff]  ;;  %v740_v55 = vld [vmem:[#allocation6 + $0x3d8] sm:$0xff] }
 0x268   :  { %520 = vmatmul.f32.vlgmr.msrb.gmra.mxu3 %v418_v40  ;;  %1287 = vmatmul.msk.f32.vlgmr.msra.gmra.mxu0 %vm157_vm0, %v1559_v41  ;;  %v709_v54 = vld [vmem:[#allocation6 + $0x2e0] sm:$0xff] }
 0x269   :  { %560 = vmatmul.f32.vlgmr.msra.gmra.mxu2 %v417_v39  ;;  %580 = vmatmul.f32.vlgmr.msra.gmra.mxu1 %v418_v40  ;;  %v621_v39 = vld [vmem:[#allocation6 + $0x20] sm:$0xff] }
 0x26a   :  { %590 = vmatpush.msra.mxu3 %v394_v57  ;;  %775 = vmatpush.msrb.mxu0 %v650_v58  ;;  %v617_v40 = vld [vmem:[#allocation6] sm:$0xff]  ;;  %v658_v57 = vld [vmem:[#allocation6 + $0x148] sm:$0xff] }
 0x26b   :  { %795 = vmatpush.msrb.mxu2 %v698_v59  ;;  %835 = vmatpush.msrb.mxu1 %v651_v60  ;;  %v705_v56 = vld [vmem:[#allocation6 + $0x2c0] sm:$0xff]  ;;  %v706_v58 = vld [vmem:[#allocation6 + $0x2c8] sm:$0xff] }
 0x26c   :  { %591 = vmatpush.msra.mxu3 %v391_v61  ;;  %776 = vmatpush.msrb.mxu0 %v647_v62  ;;  %v737_v59 = vld [vmem:[#allocation6 + $0x3c0] sm:$0xff]  ;;  %v702_v60 = vld [vmem:[#allocation6 + $0x2a8] sm:$0xff]  ;;  %v655_v61 = vld [vmem:[#allocation6 + $0x130] sm:$0xff] }
 0x26d   :  { %796 = vmatpush.msrb.mxu2 %v695_v63  ;;  %836 = vmatpush.msrb.mxu1 %v648_v0  ;;  %v703_v62 = vld [vmem:[#allocation6 + $0x2b0] sm:$0xff]  ;;  %v734_v63 = vld [vmem:[#allocation6 + $0x3a8] sm:$0xff] }
 0x26e   :  { %592 = vmatpush.msra.mxu3 %v388_v1  ;;  %777 = vmatpush.msrb.mxu0 %v644_v2  ;;  %v699_v0 = vld [vmem:[#allocation6 + $0x290] sm:$0xff]  ;;  %v652_v1 = vld [vmem:[#allocation6 + $0x118] sm:$0xff] }
 0x26f   :  { %797 = vmatpush.msrb.mxu2 %v692_v3  ;;  %837 = vmatpush.msrb.mxu1 %v645_v4  ;;  %v700_v2 = vld [vmem:[#allocation6 + $0x298] sm:$0xff]  ;;  %v731_v3 = vld [vmem:[#allocation6 + $0x390] sm:$0xff] }
 0x270   :  { %593 = vmatpush.msra.mxu3 %v385_v6  ;;  %778 = vmatpush.msrb.mxu0 %v641_v7  ;;  %v696_v4 = vld [vmem:[#allocation6 + $0x278] sm:$0xff]  ;;  %v649_v6 = vld [vmem:[#allocation6 + $0x100] sm:$0xff] }
 0x271   :  { %798 = vmatpush.msrb.mxu2 %v689_v8  ;;  %838 = vmatpush.msrb.mxu1 %v642_v9  ;;  %v697_v7 = vld [vmem:[#allocation6 + $0x280] sm:$0xff]  ;;  %v728_v8 = vld [vmem:[#allocation6 + $0x378] sm:$0xff] }
 0x272   :  { %594 = vmatpush.msra.mxu3 %v382_v10  ;;  %779 = vmatpush.msrb.mxu0 %v638_v11  ;;  %v693_v9 = vld [vmem:[#allocation6 + $0x260] sm:$0xff]  ;;  %v646_v10 = vld [vmem:[#allocation6 + $0xe8] sm:$0xff] }
 0x273   :  { %799 = vmatpush.msrb.mxu2 %v686_v12  ;;  %839 = vmatpush.msrb.mxu1 %v639_v13  ;;  %v694_v11 = vld [vmem:[#allocation6 + $0x268] sm:$0xff]  ;;  %v725_v12 = vld [vmem:[#allocation6 + $0x360] sm:$0xff] }
 0x274   :  { %595 = vmatpush.msra.mxu3 %v379_v14  ;;  %780 = vmatpush.msrb.mxu0 %v635_v15  ;;  %v690_v13 = vld [vmem:[#allocation6 + $0x248] sm:$0xff]  ;;  %v643_v14 = vld [vmem:[#allocation6 + $0xd0] sm:$0xff] }
 0x275   :  { %800 = vmatpush.msrb.mxu2 %v683_v16  ;;  %840 = vmatpush.msrb.mxu1 %v636_v17  ;;  %v691_v15 = vld [vmem:[#allocation6 + $0x250] sm:$0xff]  ;;  %v722_v16 = vld [vmem:[#allocation6 + $0x348] sm:$0xff] }
 0x276   :  { %596 = vmatpush.msra.mxu3 %v376_v18  ;;  %781 = vmatpush.msrb.mxu0 %v632_v19  ;;  %v687_v17 = vld [vmem:[#allocation6 + $0x230] sm:$0xff]  ;;  %v640_v18 = vld [vmem:[#allocation6 + $0xb8] sm:$0xff] }
 0x277   :  { %801 = vmatpush.msrb.mxu2 %v680_v20  ;;  %841 = vmatpush.msrb.mxu1 %v633_v21  ;;  %v688_v19 = vld [vmem:[#allocation6 + $0x238] sm:$0xff]  ;;  %v719_v20 = vld [vmem:[#allocation6 + $0x330] sm:$0xff] }
 0x278   :  { %597 = vmatpush.msra.mxu3 %v373_v22  ;;  %782 = vmatpush.msrb.mxu0 %v629_v23  ;;  %v684_v21 = vld [vmem:[#allocation6 + $0x218] sm:$0xff]  ;;  %v637_v22 = vld [vmem:[#allocation6 + $0xa0] sm:$0xff] }
 0x279   :  { %802 = vmatpush.msrb.mxu2 %v677_v24  ;;  %842 = vmatpush.msrb.mxu1 %v630_v25  ;;  %v685_v23 = vld [vmem:[#allocation6 + $0x220] sm:$0xff]  ;;  %v716_v24 = vld [vmem:[#allocation6 + $0x318] sm:$0xff] }
 0x27a   :  { %598 = vmatpush.msra.mxu3 %v370_v27  ;;  %783 = vmatpush.msrb.mxu0 %v626_v28  ;;  %v681_v25 = vld [vmem:[#allocation6 + $0x200] sm:$0xff]  ;;  %v634_v27 = vld [vmem:[#allocation6 + $0x88] sm:$0xff] }
 0x27b   :  { %803 = vmatpush.msrb.mxu2 %v674_v29  ;;  %843 = vmatpush.msrb.mxu1 %v627_v30  ;;  %v682_v28 = vld [vmem:[#allocation6 + $0x208] sm:$0xff]  ;;  %v713_v29 = vld [vmem:[#allocation6 + $0x300] sm:$0xff] }
 0x27c   :  { %599 = vmatpush.msra.mxu3 %v367_v31  ;;  %784 = vmatpush.msrb.mxu0 %v623_v32  ;;  %v678_v30 = vld [vmem:[#allocation6 + $0x1e8] sm:$0xff]  ;;  %v631_v31 = vld [vmem:[#allocation6 + $0x70] sm:$0xff] }
 0x27d   :  { %804 = vmatpush.msrb.mxu2 %v671_v33  ;;  %844 = vmatpush.msrb.mxu1 %v624_v34  ;;  %v679_v32 = vld [vmem:[#allocation6 + $0x1f0] sm:$0xff]  ;;  %v753_v34 = vld [vmem:[#allocation6 + $0x440] sm:$0xff] }
 0x27e   :  { %1288 = vmatmul.msk.f32.vlgmr.msra.gmra.mxu3 %vm157_vm0, %v1559_v41  ;;  %785 = vmatpush.msrb.mxu0 %v620_v35  ;;  %v664_v41 = vld [vmem:[#allocation6 + $0x178] sm:$0xff]  ;;  %v675_v33 = vld [vmem:[#allocation6 + $0x1d0] sm:$0xff] }
 0x27f   :  { %813 = vmatpush.msrb.mxu3 %v752_v37  ;;  %805 = vmatpush.msrb.mxu2 %v668_v38  ;;  %v628_v35 = vld [vmem:[#allocation6 + $0x58] sm:$0xff]  ;;  %v1575_v37 = vld.sshfl [vmem:[#allocation1 + $0x10] sm:$0xff pattern:$0x73625140] }
 0x280   :  { %845 = vmatpush.msrb.mxu1 %v621_v39  ;;  %786 = vmatpush.msrb.mxu0 %v617_v40  ;;  %v676_v38 = vld [vmem:[#allocation6 + $0x1d8] sm:$0xff]  ;;  %v750_v40 = vld [vmem:[#allocation6 + $0x428] sm:$0xff] }
 0x281   :  { %814 = vmatpush.msrb.mxu3 %v749_v42  ;;  %806 = vmatpush.msrb.mxu2 %v665_v43  ;;  %v672_v39 = vld [vmem:[#allocation6 + $0x1b8] sm:$0xff]  ;;  %v625_v42 = vld [vmem:[#allocation6 + $0x40] sm:$0xff] }
 0x282   :  { %846 = vmatpush.msrb.mxu1 %v618_v26  ;;  %787 = vmatmul.f32.vlgmr.msrb.gmra.mxu0 %v1568_v46  ;;  %v673_v43 = vld [vmem:[#allocation6 + $0x1c0] sm:$0xff] }
 0x283   :  { %807 = vmatmul.f32.vlgmr.msrb.gmra.mxu2 %v1571_v48  ;;  %815 = vmatpush.msrb.mxu3 %v746_v44  ;;  %v669_v26 = vld [vmem:[#allocation6 + $0x1a0] sm:$0xff]  ;;  %v747_v44 = vld [vmem:[#allocation6 + $0x410] sm:$0xff] }
 0x284   :  { %847 = vmatmul.f32.vlgmr.msrb.gmra.mxu1 %v1568_v46  ;;  %851 = vmatpush.msra.mxu0 %v711_v47  ;;  %v622_v47 = vld [vmem:[#allocation6 + $0x28] sm:$0xff] }
 0x285   :  { %891 = vmatpush.msra.mxu2 %v664_v41  ;;  %911 = vmatpush.msra.mxu1 %v712_v49  ;;  %v670_v41 = vld [vmem:[#allocation6 + $0x1a8] sm:$0xff] }
 0x286   :  { %816 = vmatpush.msrb.mxu3 %v743_v50  ;;  %852 = vmatpush.msra.mxu0 %v708_v51  ;;  %v666_v49 = vld [vmem:[#allocation6 + $0x188] sm:$0xff]  ;;  %v744_v50 = vld [vmem:[#allocation6 + $0x3f8] sm:$0xff]  ;;  %v619_v51 = vld [vmem:[#allocation6 + $0x10] sm:$0xff] }
 0x287   :  { %892 = vmatpush.msra.mxu2 %v661_v53  ;;  %912 = vmatpush.msra.mxu1 %v709_v54  ;;  %v667_v53 = vld [vmem:[#allocation6 + $0x190] sm:$0xff]  ;;  %v741_v54 = vld [vmem:[#allocation6 + $0x3e0] sm:$0xff] }
 0x288   :  { %817 = vmatpush.msrb.mxu3 %v740_v55  ;;  %853 = vmatpush.msra.mxu0 %v705_v56  ;;  %v738_v55 = vld [vmem:[#allocation6 + $0x3c8] sm:$0xff]  ;;  %v735_v56 = vld [vmem:[#allocation6 + $0x3b0] sm:$0xff] }
 0x289   :  { %893 = vmatpush.msra.mxu2 %v658_v57  ;;  %913 = vmatpush.msra.mxu1 %v706_v58  ;;  %v732_v57 = vld [vmem:[#allocation6 + $0x398] sm:$0xff]  ;;  %v729_v58 = vld [vmem:[#allocation6 + $0x380] sm:$0xff] }
 0x28a   :  { %818 = vmatpush.msrb.mxu3 %v737_v59  ;;  %854 = vmatpush.msra.mxu0 %v702_v60  ;;  %v726_v59 = vld [vmem:[#allocation6 + $0x368] sm:$0xff]  ;;  %v723_v60 = vld [vmem:[#allocation6 + $0x350] sm:$0xff] }
 0x28b   :  { %894 = vmatpush.msra.mxu2 %v655_v61  ;;  %914 = vmatpush.msra.mxu1 %v703_v62  ;;  %v720_v61 = vld [vmem:[#allocation6 + $0x338] sm:$0xff]  ;;  %v717_v62 = vld [vmem:[#allocation6 + $0x320] sm:$0xff] }
 0x28c   :  { %819 = vmatpush.msrb.mxu3 %v734_v63  ;;  %855 = vmatpush.msra.mxu0 %v699_v0  ;;  %v714_v63 = vld [vmem:[#allocation6 + $0x308] sm:$0xff] }
 0x28d   :  { %895 = vmatpush.msra.mxu2 %v652_v1  ;;  %915 = vmatpush.msra.mxu1 %v700_v2  ;;  %v754_v0 = vld [vmem:[#allocation6 + $0x448] sm:$0xff]  ;;  %v745_v1 = vld [vmem:[#allocation6 + $0x400] sm:$0xff] }
 0x28e   :  { %820 = vmatpush.msrb.mxu3 %v731_v3  ;;  %856 = vmatpush.msra.mxu0 %v696_v4  ;;  %v742_v2 = vld [vmem:[#allocation6 + $0x3e8] sm:$0xff]  ;;  %v739_v3 = vld [vmem:[#allocation6 + $0x3d0] sm:$0xff]  ;;  %v736_v4 = vld [vmem:[#allocation6 + $0x3b8] sm:$0xff] }
 0x28f   :  { %896 = vmatpush.msra.mxu2 %v649_v6  ;;  %916 = vmatpush.msra.mxu1 %v697_v7  ;;  %v733_v6 = vld [vmem:[#allocation6 + $0x3a0] sm:$0xff]  ;;  %v730_v7 = vld [vmem:[#allocation6 + $0x388] sm:$0xff] }
 0x290   :  { %821 = vmatpush.msrb.mxu3 %v728_v8  ;;  %857 = vmatpush.msra.mxu0 %v693_v9  ;;  %v727_v8 = vld [vmem:[#allocation6 + $0x370] sm:$0xff]  ;;  %v724_v9 = vld [vmem:[#allocation6 + $0x358] sm:$0xff] }
 0x291   :  { %897 = vmatpush.msra.mxu2 %v646_v10  ;;  %917 = vmatpush.msra.mxu1 %v694_v11  ;;  %v721_v10 = vld [vmem:[#allocation6 + $0x340] sm:$0xff]  ;;  %v718_v11 = vld [vmem:[#allocation6 + $0x328] sm:$0xff] }
 0x292   :  { %822 = vmatpush.msrb.mxu3 %v725_v12  ;;  %858 = vmatpush.msra.mxu0 %v690_v13  ;;  %v715_v12 = vld [vmem:[#allocation6 + $0x310] sm:$0xff]  ;;  %v407_v13 = vld [vmem:[%s1683_s4] sm:$0x7] }
 0x293   :  { %898 = vmatpush.msra.mxu2 %v643_v14  ;;  %918 = vmatpush.msra.mxu1 %v691_v15  ;;  %v409_v14 = vperm.slane %v407_v13, 0 }
 0x294   :  { %823 = vmatpush.msrb.mxu3 %v722_v16  ;;  %859 = vmatpush.msra.mxu0 %v687_v17 }
 0x295   :  { %899 = vmatpush.msra.mxu2 %v640_v18  ;;  %919 = vmatpush.msra.mxu1 %v688_v19 }
 0x296   :  { %824 = vmatpush.msrb.mxu3 %v719_v20  ;;  %860 = vmatpush.msra.mxu0 %v684_v21  ;;  %v410_v21 = vperm.slane %v407_v13, 1 }
 0x297   :  { %900 = vmatpush.msra.mxu2 %v637_v22  ;;  %920 = vmatpush.msra.mxu1 %v685_v23  ;;  %v411_v23 = vperm.slane %v407_v13, 2 }
 0x298   :  { %825 = vmatpush.msrb.mxu3 %v716_v24  ;;  %861 = vmatpush.msra.mxu0 %v681_v25 }
 0x299   :  { %901 = vmatpush.msra.mxu2 %v634_v27  ;;  %921 = vmatpush.msra.mxu1 %v682_v28 }
 0x29a   :  { %826 = vmatpush.msrb.mxu3 %v713_v29  ;;  %862 = vmatpush.msra.mxu0 %v678_v30 }
 0x29b   :  { %902 = vmatpush.msra.mxu2 %v631_v31  ;;  %922 = vmatpush.msra.mxu1 %v679_v32 }
 0x29c   :  { %1289 = vmatmul.msk.f32.vlgmr.msrb.gmra.mxu3 %vm157_vm0, %v1575_v37  ;;  %863 = vmatpush.msra.mxu0 %v675_v33 }
 0x29d   :  { %873 = vmatpush.msra.mxu3 %v753_v34  ;;  %903 = vmatpush.msra.mxu2 %v628_v35 }
 0x29e   :  { %923 = vmatpush.msra.mxu1 %v676_v38  ;;  %864 = vmatpush.msra.mxu0 %v672_v39 }
 0x29f   :  { %874 = vmatpush.msra.mxu3 %v750_v40  ;;  %904 = vmatpush.msra.mxu2 %v625_v42 }
 0x2a0   :  { %924 = vmatpush.msra.mxu1 %v673_v43  ;;  %865 = vmatpush.msra.mxu0 %v669_v26 }
 0x2a1   :  { %875 = vmatpush.msra.mxu3 %v747_v44  ;;  %905 = vmatpush.msra.mxu2 %v622_v47  ;;  %v755_v44 = vld [vmem:[%s1685_s6] sm:$0x7] }
 0x2a2   :  { %925 = vmatpush.msra.mxu1 %v670_v41  ;;  %866 = vmatpush.msra.mxu0 %v666_v49  ;;  %v757_v47 = vperm.slane %v755_v44, 0 }
 0x2a3   :  { %876 = vmatpush.msra.mxu3 %v744_v50  ;;  %906 = vmatpush.msra.mxu2 %v619_v51 }
 0x2a4   :  { %926 = vmatpush.msra.mxu1 %v667_v53  ;;  %867 = vmatmul.f32.vlgmr.msra.gmra.mxu0 %v1571_v48 }
 0x2a5   :  { %877 = vmatpush.msra.mxu3 %v741_v54  ;;  %907 = vmatmul.f32.vlgmr.msra.gmra.mxu2 %v1568_v46  ;;  %v751_v46 = vld [vmem:[#allocation6 + $0x430] sm:$0xff] }
 0x2a6   :  { %927 = vmatmul.f32.vlgmr.msra.gmra.mxu1 %v1571_v48  ;;  %v748_v48 = vld [vmem:[#allocation6 + $0x418] sm:$0xff] }
 0x2a7   :  { %878 = vmatpush.msra.mxu3 %v738_v55 }
 0x2a9   :  { %879 = vmatpush.msra.mxu3 %v735_v56 }
 0x2ab   :  { %880 = vmatpush.msra.mxu3 %v732_v57 }
 0x2ad   :  { %881 = vmatpush.msra.mxu3 %v729_v58  ;;  %v758_v58 = vperm.slane %v755_v44, 1 }
 0x2af   :  { %882 = vmatpush.msra.mxu3 %v726_v59 }
 0x2b1   :  { %883 = vmatpush.msra.mxu3 %v723_v60 }
 0x2b3   :  { %884 = vmatpush.msra.mxu3 %v720_v61 }
 0x2b5   :  { %885 = vmatpush.msra.mxu3 %v717_v62 }
 0x2b7   :  { %886 = vmatpush.msra.mxu3 %v714_v63 }
 0x2b8   :  { %1290 = vmatmul.msk.f32.vlgmr.msra.gmra.mxu3 %vm157_vm0, %v1575_v37 }
 0x2b9   :  { %933 = vmatpush.msrb.mxu3 %v754_v0 }
 0x2bb   :  { %934 = vmatpush.msrb.mxu3 %v751_v46 }
 0x2bd   :  { %935 = vmatpush.msrb.mxu3 %v748_v48 }
 0x2bf   :  { %936 = vmatpush.msrb.mxu3 %v745_v1 }
 0x2c1   :  { %937 = vmatpush.msrb.mxu3 %v742_v2 }
 0x2c3   :  { %938 = vmatpush.msrb.mxu3 %v739_v3 }
 0x2c5   :  { %939 = vmatpush.msrb.mxu3 %v736_v4 }
 0x2c7   :  { %940 = vmatpush.msrb.mxu3 %v733_v6 }
 0x2c9   :  { %941 = vmatpush.msrb.mxu3 %v730_v7 }
 0x2cb   :  { %942 = vmatpush.msrb.mxu3 %v727_v8 }
 0x2cd   :  { %943 = vmatpush.msrb.mxu3 %v724_v9 }
 0x2cf   :  { %944 = vmatpush.msrb.mxu3 %v721_v10 }
 0x2d1   :  { %945 = vmatpush.msrb.mxu3 %v718_v11 }
 0x2d3   :  { %946 = vmatpush.msrb.mxu3 %v715_v12 }
 0x2d4   :  { %1291 = vmatmul.msk.f32.vlgmr.msrb.gmra.mxu3 %vm157_vm0, %v1575_v37 }
 0x2dc   :  { %v481_v18 = vpop.f32.mrf.mxu0  ;;  %v501_v19 = vpop.f32.mrf.mxu1 }
 0x2dd   :  { %v502_v24 = vadd.f32 %v501_v19, %v410_v21 }
 0x2e1   :  { %v441_v15 = vpop.f32.mrf.mxu3  ;;  %v461_v17 = vpop.f32.mrf.mxu2 }
 0x2e2   :  { %v442_v16 = vadd.f32 %v441_v15, %v409_v14  ;;  %v759_v14 = vperm.slane %v755_v44, 2  ;;  %v1072_v44 = vld [vmem:[#allocation7 + $0x70] sm:$0xff] }
 0x2e4   :  { %v462_v20 = vadd.f32 %v461_v17, %v442_v16 }
 0x2e5   :  { %v541_v29 = vpop.f32.mrf.mxu0 }
 0x2e6   :  { %v482_v22 = vadd.f32 %v481_v18, %v462_v20  ;;  %v581_v31 = vpop.f32.mrf.mxu1 }
 0x2e8   :  { %v604_v35 = vmax.f32 %v482_v22, 0.0 }
 0x2eb   :  { %v521_v25 = vpop.f32.mrf.mxu3 }
 0x2ec   :  { %v522_v27 = vadd.f32 %v521_v25, %v502_v24  ;;  %v561_v28 = vpop.f32.mrf.mxu2 }
 0x2ed   :  { %v562_v30 = vadd.f32 %v561_v28, %v411_v23 }
 0x2ee   :  { %v542_v32 = vadd.f32 %v541_v29, %v522_v27 }
 0x2ef   :  { %v582_v33 = vadd.f32 %v581_v31, %v562_v30 }
 0x2f0   :  { %v605_v34 = vmax.f32 %v542_v32, 0.0 }
 0x2f2   :  { %v610_v37 = vrot.slane %v605_v34, 6 }
 0x2f4   :  { %v612_v38 = vsel %vm220_vm1, %v604_v35, %v610_v37 }
 0x2ff   :  { %v788_v41 = vpop.f32.mrf.mxu0 }
 0x300   :  { %v789_v50 = vadd.f32 %v788_v41, %v757_v47  ;;  %v1088_v47 = vld [vmem:[#allocation7 + $0xf0] sm:$0xff] }
 0x301   :  { %v601_v39 = vpop.f32.mrf.mxu3  ;;  %v848_v59 = vpop.f32.mrf.mxu1 }
 0x302   :  { %v602_v40 = vadd.f32 %v601_v39, %v582_v33  ;;  %v849_v62 = vadd.f32 %v848_v59, %v758_v58  ;;  %v1073_v39 = vld [vmem:[#allocation7 + $0x78] sm:$0xff]  ;;  %v1102_v58 = vld [vmem:[#allocation7 + $0x160] sm:$0xff] }
 0x303   :  { %1117 = vmatpush.msrb.mxu0 %v1073_v39  ;;  %v1060_v39 = vld [vmem:[#allocation7 + $0x10] sm:$0xff] }
 0x304   :  { %v606_v42 = vmax.f32 %v602_v40, 0.0  ;;  %v1089_v40 = vld [vmem:[#allocation7 + $0xf8] sm:$0xff] }
 0x305   :  { %1137 = vmatpush.msrb.mxu2 %v1089_v40  ;;  %1118 = vmatpush.msrb.mxu0 %v1072_v44  ;;  %v1076_v40 = vld [vmem:[#allocation7 + $0x90] sm:$0xff] }
 0x306   :  { %v611_v43 = vrot.slane %v606_v42, 4  ;;  %v808_v49 = vpop.f32.mrf.mxu2 }
 0x307   :  { %v809_v53 = vadd.f32 %v808_v49, %v789_v50  ;;  %1138 = vmatpush.msrb.mxu2 %v1088_v47  ;;  %v1071_v50 = vld [vmem:[#allocation7 + $0x68] sm:$0xff] }
 0x308   :  { %v1591_v26 = vsel %vm613_vm11, %v612_v38, %v611_v43  ;;  %1119 = vmatpush.msrb.mxu0 %v1071_v50  ;;  %v1059_v47 = vld [vmem:[#allocation7 + $0x8] sm:$0xff] }
 0x31f   :  { %v828_v51 = vpop.f32.mrf.mxu3 }
 0x320   :  { %v829_v54 = vadd.f32 %v828_v51, %v809_v53  ;;  %v1087_v51 = vld [vmem:[#allocation7 + $0xe8] sm:$0xff] }
 0x321   :  { %v868_v61 = vpop.f32.mrf.mxu0  ;;  %v1103_v53 = vld [vmem:[#allocation7 + $0x168] sm:$0xff]  ;;  %1139 = vmatpush.msrb.mxu2 %v1087_v51 }
 0x322   :  { %v951_v55 = vsel %vm220_vm1, %v829_v54, -inf  ;;  %v869_v0 = vadd.f32 %v868_v61, %v849_v62  ;;  %1159 = vmatpush.msrb.mxu1 %v1103_v53  ;;  %v1069_v61 = vld [vmem:[#allocation7 + $0x58] sm:$0xff]  ;;  %v1058_v53 = vld [vmem:[#allocation7] sm:$0xff] }
 0x323   :  { %v952_v56 = vrot.slane %v951_v55, 4  ;;  %v928_v19 = vpop.f32.mrf.mxu1  ;;  %v1085_v62 = vld [vmem:[#allocation7 + $0xd8] sm:$0xff] }
 0x324   :  { %1160 = vmatpush.msrb.mxu1 %v1102_v58 }
 0x325   :  { %v953_v57 = vmax.f32 %v951_v55, %v952_v56  ;;  %v1070_v56 = vld [vmem:[#allocation7 + $0x60] sm:$0xff] }
 0x326   :  { %1120 = vmatpush.msrb.mxu0 %v1070_v56 }
 0x327   :  { %v954_v60 = vrot.slane %v953_v57, 2 }
 0x328   :  { %v908_v16 = vpop.f32.mrf.mxu2  ;;  %1121 = vmatpush.msrb.mxu0 %v1069_v61 }
 0x329   :  { %v955_v63 = vmax.f32 %v953_v57, %v954_v60  ;;  %v909_v17 = vadd.f32 %v908_v16, %v759_v14  ;;  %v1086_v57 = vld [vmem:[#allocation7 + $0xe0] sm:$0xff] }
 0x32a   :  { %1140 = vmatpush.msrb.mxu2 %v1086_v57 }
 0x32b   :  { %v956_v1 = vrot.slane %v955_v63, 1  ;;  %v929_v21 = vadd.f32 %v928_v19, %v909_v17  ;;  %v1064_v17 = vld [vmem:[#allocation7 + $0x30] sm:$0xff] }
 0x32c   :  { %1141 = vmatpush.msrb.mxu2 %v1085_v62  ;;  %v1080_v19 = vld [vmem:[#allocation7 + $0xb0] sm:$0xff] }
 0x32d   :  { %v957_v6 = vmax.f32 %v955_v63, %v956_v1  ;;  %v1101_v63 = vld [vmem:[#allocation7 + $0x158] sm:$0xff]  ;;  %v1100_v1 = vld [vmem:[#allocation7 + $0x150] sm:$0xff] }
 0x32e   :  { %1161 = vmatpush.msrb.mxu1 %v1101_v63 }
 0x32f   :  { %v973_v9 = vsub.f32 %v829_v54, %v957_v6 }
 0x330   :  { %1162 = vmatpush.msrb.mxu1 %v1100_v1 }
 0x331   :  { %v976_v11 = vmul.f32 1.442695, %v973_v9  ;;  %v1098_v9 = vld [vmem:[#allocation7 + $0x140] sm:$0xff] }
 0x333   :  { %1316 = vpow2.f32 %v976_v11  ;;  %v1065_v11 = vld [vmem:[#allocation7 + $0x38] sm:$0xff] }
 0x339   :  { %v1598_v18 = vpop.eup %1316 }
 0x33a   :  { %v982_v22 = vsel %vm220_vm1, %v1598_v18, 0.0 }
 0x33b   :  { %v888_v46 = vpop.f32.mrf.mxu3  ;;  %v983_v28 = vrot.slane %v982_v22, 4 }
 0x33c   :  { %v889_v48 = vadd.f32 %v888_v46, %v869_v0  ;;  %v1068_v46 = vld [vmem:[#allocation7 + $0x50] sm:$0xff] }
 0x33d   :  { %v984_v34 = vadd.f32 %v983_v28, %v982_v22  ;;  %1122 = vmatpush.msrb.mxu0 %v1068_v46 }
 0x33e   :  { %v958_v2 = vsel %vm220_vm1, %v889_v48, -inf }
 0x33f   :  { %v959_v3 = vrot.slane %v958_v2, 4  ;;  %v985_v42 = vrot.slane %v984_v34, 2 }
 0x341   :  { %v960_v4 = vmax.f32 %v958_v2, %v959_v3  ;;  %v986_v54 = vadd.f32 %v985_v42, %v984_v34  ;;  %v1067_v2 = vld [vmem:[#allocation7 + $0x48] sm:$0xff]  ;;  %v1092_v42 = vld [vmem:[#allocation7 + $0x110] sm:$0xff] }
 0x342   :  { %v1083_v3 = vld [vmem:[#allocation7 + $0xc8] sm:$0xff]  ;;  %1123 = vmatpush.msrb.mxu0 %v1067_v2 }
 0x343   :  { %v961_v7 = vrot.slane %v960_v4, 2  ;;  %v987_v0 = vrot.slane %v986_v54, 1 }
 0x345   :  { %v962_v8 = vmax.f32 %v960_v4, %v961_v7  ;;  %v1099_v4 = vld [vmem:[#allocation7 + $0x148] sm:$0xff]  ;;  %v1610_v6 = vadd.f32 %v987_v0, %v986_v54  ;;  %v1066_v7 = vld [vmem:[#allocation7 + $0x40] sm:$0xff] }
 0x346   :  { %1163 = vmatpush.msrb.mxu1 %v1099_v4  ;;  %1124 = vmatpush.msrb.mxu0 %v1066_v7  ;;  %v1074_v54 = vld [vmem:[#allocation7 + $0x80] sm:$0xff] }
 0x347   :  { %v963_v10 = vrot.slane %v962_v8, 1  ;;  %v1014_v1 = vand.u32 2147483648, %v1610_v6  ;;  %vm1008_vm4 = vweird.f32 %v1610_v6  ;;  %v1012_v4 = vand.u32 2147483647, %v1610_v6 }
 0x348   :  { %1164 = vmatpush.msrb.mxu1 %v1098_v9  ;;  %1125 = vmatpush.msrb.mxu0 %v1065_v11 }
 0x349   :  { %v964_v12 = vmax.f32 %v962_v8, %v963_v10  ;;  %v1082_v8 = vld [vmem:[#allocation7 + $0xc0] sm:$0xff]  ;;  %vm1013_vm9 = vcmp.eq.f32.partialorder %v1012_v4, 8.507059e+37 }
 0x34a   :  { %1126 = vmatpush.msrb.mxu0 %v1064_v17 }
 0x34b   :  { %v974_v13 = vsub.f32 %v889_v48, %v964_v12  ;;  %v1084_v48 = vld [vmem:[#allocation7 + $0xd0] sm:$0xff]  ;;  %v1081_v12 = vld [vmem:[#allocation7 + $0xb8] sm:$0xff] }
 0x34c   :  { %1142 = vmatpush.msrb.mxu2 %v1084_v48 }
 0x34d   :  { %v978_v15 = vmul.f32 1.442695, %v974_v13  ;;  %v1097_v13 = vld [vmem:[#allocation7 + $0x138] sm:$0xff] }
 0x34e   :  { %1143 = vmatpush.msrb.mxu2 %v1083_v3  ;;  %1165 = vmatpush.msrb.mxu1 %v1097_v13 }
 0x34f   :  { %1318 = vpow2.f32 %v978_v15 }
 0x350   :  { %1144 = vmatpush.msrb.mxu2 %v1082_v8 }
 0x352   :  { %1145 = vmatpush.msrb.mxu2 %v1081_v12  ;;  %v1015_v12 = vor.u32 1.1754944e-38, %v1014_v1 }
 0x354   :  { %1146 = vmatpush.msrb.mxu2 %v1080_v19 }
 0x355   :  { %v1600_v20 = vpop.eup %1318 }
 0x356   :  { %v989_v23 = vsel %vm220_vm1, %v1600_v20, 0.0 }
 0x357   :  { %v948_v24 = vpop.f32.mrf.mxu3  ;;  %v990_v25 = vrot.slane %v989_v23, 4 }
 0x358   :  { %v949_v27 = vadd.f32 %v948_v24, %v929_v21  ;;  %v1096_v21 = vld [vmem:[#allocation7 + $0x130] sm:$0xff]  ;;  %v1063_v24 = vld [vmem:[#allocation7 + $0x28] sm:$0xff] }
 0x359   :  { %v991_v29 = vadd.f32 %v990_v25, %v989_v23  ;;  %1166 = vmatpush.msrb.mxu1 %v1096_v21  ;;  %v1079_v25 = vld [vmem:[#allocation7 + $0xa8] sm:$0xff]  ;;  %1127 = vmatpush.msrb.mxu0 %v1063_v24  ;;  %v616_v24 = vmul.f32 %v1591_v26, %v1556_v36 }
 0x35a   :  { %v966_v30 = vsel %vm965_vm12, %v949_v27, -inf  ;;  %1147 = vmatpush.msrb.mxu2 %v1079_v25 }
 0x35b   :  { %v967_v31 = vrot.slane %v966_v30, 4  ;;  %v992_v32 = vrot.slane %v991_v29, 2 }
 0x35d   :  { %v968_v33 = vmax.f32 %v966_v30, %v967_v31  ;;  %v993_v37 = vadd.f32 %v992_v32, %v991_v29  ;;  %v1062_v29 = vld [vmem:[#allocation7 + $0x20] sm:$0xff] }
 0x35e   :  { %v1078_v30 = vld [vmem:[#allocation7 + $0xa0] sm:$0xff]  ;;  %1128 = vmatpush.msrb.mxu0 %v1062_v29 }
 0x35f   :  { %v969_v35 = vrot.slane %v968_v33, 2  ;;  %v994_v41 = vrot.slane %v993_v37, 1  ;;  %v1094_v31 = vld [vmem:[#allocation7 + $0x120] sm:$0xff]  ;;  %1148 = vmatpush.msrb.mxu2 %v1078_v30 }
 0x361   :  { %v970_v38 = vmax.f32 %v968_v33, %v969_v35  ;;  %v1607_v59 = vadd.f32 %v994_v41, %v993_v37  ;;  %v1061_v35 = vld [vmem:[#allocation7 + $0x18] sm:$0xff]  ;;  %v1075_v41 = vld [vmem:[#allocation7 + $0x88] sm:$0xff] }
 0x362   :  { %v1077_v37 = vld [vmem:[#allocation7 + $0x98] sm:$0xff]  ;;  %1129 = vmatpush.msrb.mxu0 %v1061_v35 }
 0x363   :  { %v971_v43 = vrot.slane %v970_v38, 1  ;;  %1149 = vmatpush.msrb.mxu2 %v1077_v37  ;;  %v1029_v58 = vand.u32 2147483648, %v1607_v59  ;;  %vm1023_vm14 = vweird.f32 %v1607_v59  ;;  %v1027_v61 = vand.u32 2147483647, %v1607_v59 }
 0x364   :  { %1130 = vmatpush.msrb.mxu0 %v1060_v39 }
 0x365   :  { %v972_v49 = vmax.f32 %v970_v38, %v971_v43  ;;  %v1093_v38 = vld [vmem:[#allocation7 + $0x118] sm:$0xff]  ;;  %1150 = vmatpush.msrb.mxu2 %v1076_v40  ;;  %v1030_v0 = vor.u32 1.1754944e-38, %v1029_v58  ;;  %vm1028_vm3 = vcmp.eq.f32.partialorder %v1027_v61, 8.507059e+37 }
 0x366   :  { %1131 = vmatpush.msrb.mxu0 %v1059_v47  ;;  %v1233_v47 = vpop.xlane.xlu0 %1232 }
 0x367   :  { %v975_v55 = vsub.f32 %v949_v27, %v972_v49  ;;  %v1095_v27 = vld [vmem:[#allocation7 + $0x128] sm:$0xff]  ;;  %1151 = vmatpush.msrb.mxu2 %v1075_v41 }
 0x368   :  { %1167 = vmatpush.msrb.mxu1 %v1095_v27  ;;  %v1091_v49 = vld [vmem:[#allocation7 + $0x108] sm:$0xff]  ;;  %1132 = vmatpush.msrb.mxu0 %v1058_v53 }
 0x369   :  { %v980_v60 = vmul.f32 1.442695, %v975_v55  ;;  %v1090_v55 = vld [vmem:[#allocation7 + $0x100] sm:$0xff]  ;;  %1152 = vmatpush.msrb.mxu2 %v1074_v54 }
 0x36a   :  { %1168 = vmatpush.msrb.mxu1 %v1094_v31 }
 0x36b   :  { %1320 = vpow2.f32 %v980_v60 }
 0x36c   :  { %1322 = vrcp.f32 %v1607_v59  ;;  %1169 = vmatpush.msrb.mxu1 %v1093_v38 }
 0x36d   :  { %1324 = vrcp.f32 %v1610_v6 }
 0x36e   :  { %1170 = vmatpush.msrb.mxu1 %v1092_v42  ;;  %v99_v42 = vld [vmem:[%s1688_s9] sm:$0x3] }
 0x370   :  { %1171 = vmatpush.msrb.mxu1 %v1091_v49 }
 0x371   :  { %v1612_v10 = vpop.eup %1320 }
 0x372   :  { %v1614_v14 = vpop.eup %1322  ;;  %v996_v15 = vsel %vm965_vm12, %v1612_v10, 0.0  ;;  %1172 = vmatpush.msrb.mxu1 %v1090_v55 }
 0x373   :  { %v997_v16 = vrot.slane %v996_v15, 4  ;;  %v1019_v22 = vmul.f32 %v1614_v14, %v1607_v59  ;;  %v1621_v32 = vpop.eup %1324  ;;  %vm1024_vm13 = vweird.f32 %v1614_v14 }
 0x374   :  { %v1004_v43 = vmul.f32 %v1621_v32, %v1610_v6  ;;  %vm1025_vm15 = vmor %vm1023_vm14, %vm1024_vm13  ;;  %vm1009_vm2 = vweird.f32 %v1621_v32 }
 0x375   :  { %v998_v23 = vadd.f32 %v997_v16, %v996_v15  ;;  %v1020_v33 = vsub.f32 1.0, %v1019_v22  ;;  %vm1010_vm5 = vmor %vm1008_vm4, %vm1009_vm2 }
 0x376   :  { %v1005_v56 = vsub.f32 1.0, %v1004_v43  ;;  %v1453_v43 = vmov 0  }
 0x377   :  { %v999_v28 = vrot.slane %v998_v23, 2  ;;  %v1021_v50 = vmul.f32 %v1614_v14, %v1020_v33  ;;  %1305 = vset.pattern.permute.xlu0 %v1453_v43 }
 0x378   :  { %v1006_v60 = vmul.f32 %v1621_v32, %v1005_v56  ;;  %1219 = vperm.xlu0 %1305, %v99_v42  }
 0x379   :  { %v1000_v34 = vadd.f32 %v999_v28, %v998_v23  ;;  %v1022_v57 = vadd.f32 %v1614_v14, %v1021_v50  ;;  %v1234_v50 = vsub.f32 %v1548_v52, %v1233_v47 }
 0x37a   :  { %v1007_v48 = vadd.f32 %v1621_v32, %v1006_v60 }
 0x37b   :  { %v1001_v44 = vrot.slane %v1000_v34, 1  ;;  %v1026_v63 = vsel %vm1025_vm15, %v1614_v14, %v1022_v57  ;;  %v1235_v56 = vmul.f32 1.442695, %v1234_v50 }
 0x37c   :  { %v1031_v2 = vsel %vm1028_vm3, %v1030_v0, %v1026_v63  ;;  %v1011_v9 = vsel %vm1010_vm5, %v1621_v32, %v1007_v48 }
 0x37d   :  { %v1002_v51 = vadd.f32 %v1001_v44, %v1000_v34  ;;  %v1032_v11 = vmul.f32 %v1600_v20, %v1031_v2  ;;  %v1016_v15 = vsel %vm1013_vm9, %v1015_v12, %v1011_v9 }
 0x37e   :  { %v1017_v21 = vmul.f32 %v1598_v18, %v1016_v15  ;;  %v1307_v18 = vld [vmem:[%s1687_s8] ss:$0 sm:$0xff] }
 0x37f   :  { %1326 = vrcp.f32 %v1002_v51  ;;  %v1044_v59 = vand.u32 2147483648, %v1002_v51  ;;  %v1042_v8 = vand.u32 2147483647, %v1002_v51  ;;  %vm1038_vm8 = vweird.f32 %v1002_v51 }
 0x380   :  { %v1051_v17 = vrot.slane %v1032_v11, 6 }
 0x381   :  { %v1045_v14 = vor.u32 1.1754944e-38, %v1044_v59  ;;  %vm1043_vm12 = vcmp.eq.f32.partialorder %v1042_v8, 8.507059e+37 }
 0x382   :  { %v1053_v23 = vsel %vm220_vm1, %v1017_v21, %v1051_v17 }
 0x385   :  { %v1327_v62 = vpop.eup %1326 }
 0x386   :  { %v1034_v46 = vmul.f32 %v1327_v62, %v1002_v51  ;;  %vm1039_vm7 = vweird.f32 %v1327_v62 }
 0x387   :  { %vm1040_vm10 = vmor %vm1038_vm8, %vm1039_vm7 }
 0x388   :  { %v1035_v3 = vsub.f32 1.0, %v1034_v46 }
 0x38a   :  { %v1036_v7 = vmul.f32 %v1327_v62, %v1035_v3 }
 0x38c   :  { %v1037_v13 = vadd.f32 %v1327_v62, %v1036_v7 }
 0x38e   :  { %v1041_v16 = vsel %vm1040_vm10, %v1327_v62, %v1037_v13 }
 0x38f   :  { %v1046_v6 = vsel %vm1043_vm12, %v1045_v14, %v1041_v16 }
 0x390   :  { %v1047_v19 = vmul.f32 %v1612_v10, %v1046_v6 }
 0x392   :  { %v1052_v22 = vrot.slane %v1047_v19, 4 }
 0x394   :  { %v1054_v20 = vsel %vm613_vm11, %v1053_v23, %v1052_v22 }
 0x395   :  { %v1056_v25 = vmul.f32 %v1054_v20, %v1556_v36 }
 0x397   :  { %v1057_v27 = vadd.f32 %v1056_v25, %v616_v24 }
 0x399   :  { %1109 = vst [vmem:[#allocation1] ss:$4 sm:$0xff] %v1057_v27 }
 0x3a0   :  { %v1110_v28 = vld.sshfl [vmem:[#allocation1] sm:$0xff pattern:$0x73625140]  ;;  %v1111_v29 = vld.sshfl [vmem:[#allocation1 + $0x8] sm:$0xff pattern:$0x73625140] }
 0x3a1   :  { %1133 = vmatmul.f32.vlgmr.msrb.gmra.mxu0 %v1110_v28  ;;  %1153 = vmatmul.f32.vlgmr.msrb.gmra.mxu2 %v1111_v29  ;;  %v1112_v30 = vld.sshfl [vmem:[#allocation1 + $0x10] sm:$0xff pattern:$0x73625140]  ;;  %v1454_v28 = vmov 2.0  }
 0x3a2   :  { %1292 = vmatmul.msk.f32.vlgmr.msrb.gmra.mxu1 %vm157_vm0, %v1112_v30 }
 0x3ea   :  { %v1220_v11 = vpop.permute.xlu0 %1219 }
 0x3eb   :  { %vm1221_vm15 = vcmp.eq.s32.totalorder %v1541_v45, %v1220_v11 }
 0x3ec   :  { %v1293_v15 = vsel %vm1221_vm15, 1.0, %v1452_v5 }
 0x41e   :  { %v1134_v10 = vpop.f32.mrf.mxu0 }
 0x41f   :  { %v1135_v31 = vadd.f32 %v1307_v18, %v1134_v10  ;;  %v1174_v26 = vpop.f32.mrf.mxu1 }
 0x424   :  { %v1154_v32 = vpop.f32.mrf.mxu2 }
 0x425   :  { %v1155_v33 = vadd.f32 %v1154_v32, %v1135_v31 }
 0x427   :  { %v1175_v34 = vadd.f32 %v1174_v26, %v1155_v33 }
 0x429   :  { %v1177_v36 = vsel %vm220_vm1, %v1175_v34, -inf }
 0x42a   :  { %1178 = vmax.xlane.f32.xlu1 %v1177_v36 }
 0x49d   :  { %v1179_v35 = vpop.xlane.xlu1 %1178 }
 0x49e   :  { %v1180_v37 = vsub.f32 %v1175_v34, %v1179_v35 }
 0x4a0   :  { %v1181_v38 = vmul.f32 1.442695, %v1180_v37 }
 0x4a2   :  { %1328 = vpow2.f32 %v1181_v38 }
 0x4a8   :  { %v1329_v39 = vpop.eup %1328 }
 0x4a9   :  { %v1183_v40 = vsel %vm220_vm1, %v1329_v39, 0.0 }
 0x4aa   :  { %1184 = vadd.xlane.f32.xlu2 %v1183_v40 }
 0x51d   :  { %v1185_v44 = vpop.xlane.xlu2 %1184 }
 0x51e   :  { %1330 = vrcp.f32 %v1185_v44  ;;  %v1197_v53 = vand.u32 2147483648, %v1185_v44  ;;  %v1195_v55 = vand.u32 2147483647, %v1185_v44  ;;  %vm1191_vm11 = vweird.f32 %v1185_v44 }
 0x51f   :  { %1332 = vpow2.f32 %v1235_v56 }
 0x520   :  { %v1198_v58 = vor.u32 1.1754944e-38, %v1197_v53  ;;  %vm1196_vm14 = vcmp.eq.f32.partialorder %v1195_v55, 8.507059e+37 }
 0x524   :  { %v1331_v41 = vpop.eup %1330 }
 0x525   :  { %v1187_v49 = vmul.f32 %v1331_v41, %v1185_v44  ;;  %vm1192_vm0 = vweird.f32 %v1331_v41  ;;  %v1333_v46 = vpop.eup %1332 }
 0x526   :  { %vm1193_vm13 = vmor %vm1191_vm11, %vm1192_vm0  ;;  %v1237_v48 = vsel %vm1203_vm6, %v1333_v46, 0.0 }
 0x527   :  { %v1188_v51 = vsub.f32 1.0, %v1187_v49  ;;  %v1238_v1 = vsel %vm220_vm1, %v1237_v48, 0.0 }
 0x529   :  { %v1189_v54 = vmul.f32 %v1331_v41, %v1188_v51 }
 0x52b   :  { %v1190_v57 = vadd.f32 %v1331_v41, %v1189_v54 }
 0x52d   :  { %v1194_v60 = vsel %vm1193_vm13, %v1331_v41, %v1190_v57 }
 0x52e   :  { %v1199_v61 = vsel %vm1196_vm14, %v1198_v58, %v1194_v60 }
 0x52f   :  { %v1200_v62 = vmul.f32 %v1329_v39, %v1199_v61 }
 0x531   :  { %v1204_v63 = vsel %vm1203_vm6, %v1200_v62, -1e+30  ;;  %1275 = vst [vmem:[%s1689_s10] sm:$0x3] %v1200_v62 }
 0x532   :  { %v1205_v0 = vsel %vm220_vm1, %v1204_v63, -inf }
 0x533   :  { %1206 = vmax.xlane.f32.xlu2 %v1205_v0 }
 0x53b   :  { %1239 = vadd.xlane.f32.xlu2 %v1238_v1 }
 0x5a6   :  { %v1207_v2 = vpop.xlane.xlu2 %1206 }
 0x5a7   :  { %v1208_v3 = vsub.f32 %v1204_v63, %v1207_v2 }
 0x5a9   :  { %v1209_v4 = vmul.f32 1.442695, %v1208_v3 }
 0x5ab   :  { %1334 = vpow2.f32 %v1209_v4 }
 0x5ae   :  { %v1240_v59 = vpop.xlane.xlu2 %1239 }
 0x5af   :  { %1336 = vlog2.f32 %v1240_v59 }
 0x5b1   :  { %v1335_v7 = vpop.eup %1334 }
 0x5b2   :  { %v1211_v8 = vsel %vm1203_vm6, %v1335_v7, 0.0 }
 0x5b3   :  { %v1212_v9 = vsel %vm220_vm1, %v1211_v8, 0.0 }
 0x5b4   :  { %1213 = vadd.xlane.f32.xlu1 %v1212_v9 }
 0x5b5   :  { %v1337_v12 = vpop.eup %1336 }
 0x5b6   :  { %v1242_v13 = vmul.f32 0.6931472, %v1337_v12 }
 0x5b8   :  { %v1243_v14 = vadd.f32 %v1242_v13, %v1233_v47 }
 0x5ba   :  { %v1244_v16 = vsub.f32 %v1548_v52, %v1243_v14 }
 0x5bc   :  { %v1245_v17 = vmul.f32 %v1293_v15, %v1244_v16 }
 0x5be   :  { %v1246_v6 = vsel %vm220_vm1, %v1245_v17, 0.0 }
 0x5bf   :  { %1247 = vadd.xlane.f32.xlu2 %v1246_v6 }
 0x627   :  { %v1214_v19 = vpop.xlane.xlu1 %1213 }
 0x628   :  { %1338 = vlog2.f32 %v1214_v19 }
 0x629   :  { %1340 = vrcp.f32 %v1454_v28 }
 0x62e   :  { %v1339_v21 = vpop.eup %1338 }
 0x62f   :  { %v1216_v22 = vmul.f32 0.6931472, %v1339_v21  ;;  %v1341_v29 = vpop.eup %1340 }
 0x630   :  { %v1258_v18 = vmul.f32 2.0, %v1341_v29  ;;  %vm1262_vm6 = vweird.f32 %v1341_v29 }
 0x631   :  { %v1217_v23 = vadd.f32 %v1216_v22, %v1207_v2 }
 0x632   :  { %v1248_v45 = vpop.xlane.xlu2 %1247  ;;  %v1259_v32 = vsub.f32 1.0, %v1258_v18 }
 0x633   :  { %v1224_v20 = vsub.f32 %v1204_v63, %v1217_v23  ;;  %v1249_v27 = vsub.f32 0.0, %v1248_v45 }
 0x634   :  { %v1260_v35 = vmul.f32 %v1341_v29, %v1259_v32 }
 0x635   :  { %v1225_v24 = vmul.f32 %v1293_v15, %v1224_v20  ;;  %v1265_v5 = vsel %vm220_vm1, %v1249_v27, 0.0 }
 0x636   :  { %v1266_v52 = vrot.slane %v1265_v5, 4  ;;  %v1261_v40 = vadd.f32 %v1341_v29, %v1260_v35 }
 0x637   :  { %v1226_v25 = vsel %vm220_vm1, %v1225_v24, 0.0 }
 0x638   :  { %1227 = vadd.xlane.f32.xlu1 %v1226_v25  ;;  %v1267_v30 = vadd.f32 %v1266_v52, %v1265_v5  ;;  %v1263_v47 = vsel %vm1262_vm6, %v1341_v29, %v1261_v40 }
 0x63a   :  { %v1268_v10 = vrot.slane %v1267_v30, 2 }
 0x63c   :  { %v1269_v34 = vadd.f32 %v1268_v10, %v1267_v30 }
 0x63e   :  { %v1270_v38 = vrot.slane %v1269_v34, 1 }
 0x640   :  { %v1271_v43 = vadd.f32 %v1270_v38, %v1269_v34 }
 0x642   :  { %v1272_v49 = vmul.f32 %v1271_v43, %v1263_v47 }
 0x6ab   :  { %v1228_v31 = vpop.xlane.xlu1 %1227 }
 0x6ac   :  { %v1229_v33 = vsub.f32 0.0, %v1228_v31 }
 0x6ae   :  { %v1250_v26 = vsel %vm220_vm1, %v1229_v33, 0.0 }
 0x6af   :  { %v1251_v36 = vrot.slane %v1250_v26, 4 }
 0x6b1   :  { %v1252_v37 = vadd.f32 %v1251_v36, %v1250_v26 }
 0x6b3   :  { %v1253_v39 = vrot.slane %v1252_v37, 2 }
 0x6b5   :  { %v1254_v42 = vadd.f32 %v1253_v39, %v1252_v37 }
 0x6b7   :  { %v1255_v44 = vrot.slane %v1254_v42, 1 }
 0x6b9   :  { %v1256_v41 = vadd.f32 %v1255_v44, %v1254_v42 }
 0x6bb   :  { %v1264_v50 = vmul.f32 %v1263_v47, %v1256_v41 }
 0x6bd   :  { %v1273_v51 = vadd.f32 %v1272_v49, %v1264_v50 }
 0x6bf   :  { %1277 = vst [vmem:[%s1689_s10 + $0x4] sm:$0x1] %v1273_v51 }
 0x6c0   :  { %1282 = vsyncpa [#allocation3], 1 }
 0x6c1   :  { %1283 = vsyncpa [#allocation5], 1 }
 0x6c2   :  { %1284 = vsyncpa [#allocation8], 1 }

</bundles_post_ra>
